<compile_context>
chip_gen: v7x
topology: tpu7x:2x2x1
jax: 0.10.0
libtpu: 0.0.40
codegen_flags: <defaults>
</compile_context>

<pallas_src>
import functools

import jax
import jax.numpy as jnp
from jax.experimental import pallas as pl
from jax.experimental.pallas import tpu as pltpu

EPS = 1e-5  # torch.nn.LayerNorm default eps


def _layernorm(x, g, b):
    m = jnp.mean(x, axis=-1, keepdims=True)
    v = jnp.mean((x - m) ** 2, axis=-1, keepdims=True)  # biased var, like torch LN
    return (x - m) * jax.lax.rsqrt(v + EPS) * g + b


def _point_aggregate_kernel(aggre_out, compute_dtype,
                            x_ref, w_ref, v_ref, out_ref):
    bt, n, h = x_ref.shape
    x_inp = x_ref[...].reshape(bt * n, h)           # (M, H) f32, M = bt*N

    W = w_ref[...]                                   # (5, H, H) in compute_dtype
    V = v_ref[...]                                   # (16, H) f32
    w1, w2, w3a, w3b, w4 = W[0], W[1], W[2], W[3], W[4]
    vrow = lambda i: V[i:i + 1]                      # (1, H), static slice

    def dot(a, w):
        # Cast activations at the dot only (weights pre-cast in the wrapper),
        # accumulate in f32; LayerNorm/ReLU/residual stay f32 on the VPU.
        return jnp.dot(a.astype(compute_dtype), w,
                       preferred_element_type=jnp.float32)

    # ---- fc1: Linear -> LN -> ReLU -> Linear -> LN -> ReLU ----
    t = dot(x_inp, w1) + vrow(0)
    t = jnp.maximum(_layernorm(t, vrow(1), vrow(2)), 0.0)
    t = dot(t, w2) + vrow(3)
    x = jnp.maximum(_layernorm(t, vrow(4), vrow(5)), 0.0)       # (M, H)

    # ---- per-batch global max-pool over the N points ----
    x_aggre = jnp.max(x.reshape(bt, n, h), axis=1)              # (bt, H)

    # ---- fc2 on concat([x, repeat(x_aggre)], -1); concat folded into split W3.
    #      The aggregate term is ONE batched (bt,H)@(H,H) MXU pass per step. ----
    agg = dot(x_aggre, w3b)                                     # (bt, H)
    t = dot(x, w3a).reshape(bt, n, h) + agg[:, None, :]
    t = t.reshape(bt * n, h) + vrow(6)
    t = jnp.maximum(_layernorm(t, vrow(7), vrow(8)), 0.0)
    t = dot(t, w4) + vrow(9)
    t = jnp.maximum(_layernorm(t, vrow(10), vrow(11)), 0.0)

    # ---- residual + final LayerNorm (f32) ----
    out = _layernorm(x_inp + t, vrow(12), vrow(13))             # (M, H)

    if aggre_out:
        out_ref[0] = jnp.max(out.reshape(bt, n, h), axis=1)     # (bt, H)
    else:
        out_ref[...] = out.reshape(bt, n, h)                    # (bt, N, H)


def _choose_block_batch(B, N, H):
    """Batch elements per grid step.

    - Fill ~256 MXU rows per step (bt*N ~ 256).
    - Keep >= 2 grid steps when B >= 2 so v7x's two TensorCores both get work
      (dimension_semantics=("parallel",) shards the grid across them).
    - Cap the per-step working set well under 8 MiB so it fits every
      generation's scoped-VMEM default (16 MiB v5e / 32 MiB v6e, v7x; 64 MiB
      physical on v7x) without needing vmem_limit_bytes.
    """
    bt = max(1, 256 // max(N, 1))
    if B >= 2:
        bt = min(bt, max(1, B // 2))
    else:
        bt = 1
    # ~2x double-buffered (bt,N,H) x/out blocks + ~6 live (bt*N,H) f32
    # intermediates + packed params  =>  ~12 * bt*N*H * 4 bytes.
    budget = 8 * 1024 * 1024
    while bt > 1 and 12 * bt * N * H * 4 > budget:
        bt = (bt + 1) // 2
    return bt


def point_aggregate_block(x, params, aggre_out, *, compute_dtype=jnp.float32):
    """x: (B, N, H) float32. Returns (B, N, H) if not aggre_out else (B, H).

    compute_dtype=jnp.bfloat16 runs the five matmuls with bf16 inputs
    (f32 accumulation, f32 LayerNorm/ReLU/residual) -- the MXU fast path
    on v5e/v6e."""
    B, N, H = x.shape
    bt = _choose_block_batch(B, N, H)
    g = pl.cdiv(B, bt)
    b_pad = g * bt
    if b_pad != B:
        x = jnp.pad(x, ((0, b_pad - B), (0, 0), (0, 0)))

    # Pack parameters: 5 HxH weights -> (5,H,H); 14 (1,H) vectors -> (16,H).
    w_pack = jnp.stack([params["w1"], params["w2"], params["w3a"],
                        params["w3b"], params["w4"]]).astype(compute_dtype)
    v_pack = jnp.concatenate(
        [params["b1"], params["g1"], params["be1"],
         params["b2"], params["g2"], params["be2"],
         params["b3"], params["g3"], params["be3"],
         params["b4"], params["g4"], params["be4"],
         params["gn"], params["bn"],
         jnp.zeros((2, H), jnp.float32)], axis=0)               # (16, H)

    if aggre_out:
        # Shaped (g, bt, H) so the last two block dims always equal the full
        # array dims regardless of bt; reshaped to (B, H) in the wrapper.
        out_shape = jax.ShapeDtypeStruct((g, bt, H), jnp.float32)
        out_spec = pl.BlockSpec((1, bt, H), lambda i: (i, 0, 0))
    else:
        out_shape = jax.ShapeDtypeStruct((b_pad, N, H), jnp.float32)
        out_spec = pl.BlockSpec((bt, N, H), lambda i: (i, 0, 0))

    fn = pl.pallas_call(
        functools.partial(_point_aggregate_kernel, aggre_out, compute_dtype),
        out_shape=out_shape,
        grid_spec=pltpu.PrefetchScalarGridSpec(
            num_scalar_prefetch=0,
            grid=(g,),
            in_specs=[
                pl.BlockSpec((bt, N, H), lambda i: (i, 0, 0)),
                # Constant-index parameter blocks: DMA'd once, reused across
                # grid steps.  (At H=32 double-buffering them is negligible; at
                # large H, pipeline_mode=pl.Buffered(1) would pin them
                # single-buffered.)
                pl.BlockSpec((5, H, H), lambda i: (0, 0, 0)),
                pl.BlockSpec((16, H), lambda i: (0, 0)),
            ],
            out_specs=out_spec,
        ),
        compiler_params=pltpu.CompilerParams(
            dimension_semantics=("parallel",)),
    )
    out = fn(x, w_pack, v_pack)
    if aggre_out:
        # torch's .squeeze() removes the size-1 pooled points dim (B > 1 here).
        return out.reshape(b_pad, H)[:B]
    return out[:B]


# ---------------- deterministic parameter construction ----------------
def make_params(key, hidden):
    H = hidden
    ks = jax.random.split(key, 16)

    def lin(k, fan_in, fan_out):
        bound = 1.0 / jnp.sqrt(jnp.float32(fan_in))
        kw, kb = jax.random.split(k)
        w = jax.random.uniform(kw, (fan_in, fan_out), jnp.float32, -bound, bound)
        b = jax.random.uniform(kb, (1, fan_out), jnp.float32, -bound, bound)
        return w, b

    def ln_params(k):
        kg, kb = jax.random.split(k)
        g = 1.0 + 0.1 * jax.random.normal(kg, (1, H), jnp.float32)
        b = 0.1 * jax.random.normal(kb, (1, H), jnp.float32)
        return g, b

    w1, b1 = lin(ks[0], H, H)
    g1, be1 = ln_params(ks[1])
    w2, b2 = lin(ks[2], H, H)
    g2, be2 = ln_params(ks[3])
    w3, b3 = lin(ks[4], 2 * H, H)          # fc2 first Linear: in = 2H
    g3, be3 = ln_params(ks[5])
    w4, b4 = lin(ks[6], H, H)
    g4, be4 = ln_params(ks[7])
    gn, bn = ln_params(ks[8])

    return dict(
        w1=w1, b1=b1, g1=g1, be1=be1,
        w2=w2, b2=b2, g2=g2, be2=be2,
        w3=w3, w3a=w3[:H], w3b=w3[H:], b3=b3, g3=g3, be3=be3,
        w4=w4, b4=b4, g4=g4, be4=be4,
        gn=gn, bn=bn,
    )


# ---------------- pure-JAX reference (mirrors the torch forward) ----------------
def reference(x, p, aggre_out):
    def ln(v, g, b):
        m = v.mean(-1, keepdims=True)
        var = ((v - m) ** 2).mean(-1, keepdims=True)
        return (v - m) / jnp.sqrt(var + EPS) * g + b

    h = x @ p["w1"] + p["b1"]
    h = jax.nn.relu(ln(h, p["g1"], p["be1"]))
    h = h @ p["w2"] + p["b2"]
    xx = jax.nn.relu(ln(h, p["g2"], p["be2"]))
    agg = jnp.max(xx, axis=1, keepdims=True)
    cat = jnp.concatenate([xx, jnp.broadcast_to(agg, xx.shape)], axis=-1)
    h = cat @ p["w3"] + p["b3"]
    h = jax.nn.relu(ln(h, p["g3"], p["be3"]))
    h = h @ p["w4"] + p["b4"]
    h = jax.nn.relu(ln(h, p["g4"], p["be4"]))
    out = ln(x + h, p["gn"], p["bn"])
    if aggre_out:
        return jnp.squeeze(jnp.max(out, axis=1, keepdims=True), axis=1)
    return out


if __name__ == "__main__":
    B, N, H = 16, 8, 32   # bt=8 -> grid of 2 batched steps (64 MXU rows each)
    key = jax.random.PRNGKey(0)
    kx, kp = jax.random.split(key)
    x = jax.random.normal(kx, (B, N, H), jnp.float32)
    params = make_params(kp, H)

    # f32 matmul path, aggre_out=False: (B, N, H)
    out_full = jax.block_until_ready(point_aggregate_block(x, params, aggre_out=False))
    ref_full = reference(x, params, aggre_out=False)
    assert out_full.shape == (B, N, H)
    assert jnp.allclose(out_full, ref_full, atol=1e-3, rtol=1e-3)

    # f32 matmul path, aggre_out=True: (B, H)
    out_agg = jax.block_until_ready(point_aggregate_block(x, params, aggre_out=True))
    ref_agg = reference(x, params, aggre_out=True)
    assert out_agg.shape == (B, H)
    assert jnp.allclose(out_agg, ref_agg, atol=1e-3, rtol=1e-3)

    # bf16-matmul fast path (v5e/v6e MXU): LN/ReLU/residual stay f32.
    out_bf16 = jax.block_until_ready(
        point_aggregate_block(x, params, aggre_out=False,
                              compute_dtype=jnp.bfloat16))
    max_err = float(jnp.max(jnp.abs(out_bf16 - ref_full)))
    assert max_err < 1e-1, f"bf16 matmul path max abs err {max_err}"

    print("KERNEL_OK")
</pallas_src>

<mosaic_0001>
module attributes {stable_mosaic.version = 11 : i64} {
  func.func @_point_aggregate_kernel(%arg0: i32, %arg1: memref<8x8x32xf32, #tpu.memory_space<vmem>>, %arg2: memref<5x32x32xf32, #tpu.memory_space<vmem>>, %arg3: memref<16x32xf32, #tpu.memory_space<vmem>>, %arg4: memref<8x8x32xf32, #tpu.memory_space<vmem>>) attributes {dimension_semantics = [#tpu.dimension_semantics<parallel>], iteration_bounds = array<i64: 2>, scalar_prefetch = 0 : i64, scratch_operands = 0 : i64, tpu.core_type = #tpu.core_type<tc>, window_params = [{transform_indices = @transform_0, window_bounds = array<i64: 8, 8, 32>}, {pipeline_mode = #tpu.pipeline_mode<synchronous>, transform_indices = @transform_1, window_bounds = array<i64: 5, 32, 32>}, {pipeline_mode = #tpu.pipeline_mode<synchronous>, transform_indices = @transform_2, window_bounds = array<i64: 16, 32>}, {transform_indices = @transform_3, window_bounds = array<i64: 8, 8, 32>}]} {
    %c0 = arith.constant 0 : index
    %c0_0 = arith.constant 0 : index
    %c0_1 = arith.constant 0 : index
    %0 = vector.load %arg1[%c0, %c0_0, %c0_1] : memref<8x8x32xf32, #tpu.memory_space<vmem>>, vector<8x8x32xf32>
    %1 = vector.shape_cast %0 : vector<8x8x32xf32> to vector<64x32xf32>
    %c0_2 = arith.constant 0 : index
    %c0_3 = arith.constant 0 : index
    %c0_4 = arith.constant 0 : index
    %2 = vector.load %arg2[%c0_2, %c0_3, %c0_4] : memref<5x32x32xf32, #tpu.memory_space<vmem>>, vector<5x32x32xf32>
    %c0_5 = arith.constant 0 : index
    %c0_6 = arith.constant 0 : index
    %3 = vector.load %arg3[%c0_5, %c0_6] : memref<16x32xf32, #tpu.memory_space<vmem>>, vector<16x32xf32>
    %4 = vector.extract_strided_slice %2 {offsets = [0, 0, 0], sizes = [1, 32, 32], strides = [1, 1, 1]} : vector<5x32x32xf32> to vector<1x32x32xf32>
    %5 = vector.shape_cast %4 : vector<1x32x32xf32> to vector<32x32xf32>
    %6 = vector.extract_strided_slice %2 {offsets = [1, 0, 0], sizes = [1, 32, 32], strides = [1, 1, 1]} : vector<5x32x32xf32> to vector<1x32x32xf32>
    %7 = vector.shape_cast %6 : vector<1x32x32xf32> to vector<32x32xf32>
    %8 = vector.extract_strided_slice %2 {offsets = [2, 0, 0], sizes = [1, 32, 32], strides = [1, 1, 1]} : vector<5x32x32xf32> to vector<1x32x32xf32>
    %9 = vector.shape_cast %8 : vector<1x32x32xf32> to vector<32x32xf32>
    %10 = vector.extract_strided_slice %2 {offsets = [3, 0, 0], sizes = [1, 32, 32], strides = [1, 1, 1]} : vector<5x32x32xf32> to vector<1x32x32xf32>
    %11 = vector.shape_cast %10 : vector<1x32x32xf32> to vector<32x32xf32>
    %12 = vector.extract_strided_slice %2 {offsets = [4, 0, 0], sizes = [1, 32, 32], strides = [1, 1, 1]} : vector<5x32x32xf32> to vector<1x32x32xf32>
    %13 = vector.shape_cast %12 : vector<1x32x32xf32> to vector<32x32xf32>
    %cst = arith.constant dense<0.000000e+00> : vector<64x32xf32>
    %14 = tpu.matmul %1, %5, %cst {dimension_numbers = #tpu.dot_dimension_numbers<[1], [0], [0], [1], [0, 0, 1, 1], [], []>} : vector<64x32xf32>, vector<32x32xf32>, vector<64x32xf32> -> vector<64x32xf32>
    %15 = vector.extract_strided_slice %3 {offsets = [0, 0], sizes = [1, 32], strides = [1, 1]} : vector<16x32xf32> to vector<1x32xf32>
    %16 = vector.broadcast %15 : vector<1x32xf32> to vector<64x32xf32>
    %17 = arith.addf %14, %16 : vector<64x32xf32>
    %18 = vector.extract_strided_slice %3 {offsets = [1, 0], sizes = [1, 32], strides = [1, 1]} : vector<16x32xf32> to vector<1x32xf32>
    %19 = vector.extract_strided_slice %3 {offsets = [2, 0], sizes = [1, 32], strides = [1, 1]} : vector<16x32xf32> to vector<1x32xf32>
    %cst_7 = arith.constant dense<0.000000e+00> : vector<64xf32>
    %20 = vector.multi_reduction <add>, %17, %cst_7 [1] : vector<64x32xf32> to vector<64xf32>
    %21 = vector.shape_cast %20 : vector<64xf32> to vector<64x1xf32>
    %cst_8 = arith.constant 3.200000e+01 : f32
    %22 = vector.broadcast %cst_8 : f32 to vector<64x1xf32>
    %23 = arith.divf %21, %22 : vector<64x1xf32>
    %24 = vector.broadcast %23 : vector<64x1xf32> to vector<64x32xf32>
    %25 = arith.subf %17, %24 : vector<64x32xf32>
    %26 = arith.mulf %25, %25 : vector<64x32xf32>
    %cst_9 = arith.constant dense<0.000000e+00> : vector<64xf32>
    %27 = vector.multi_reduction <add>, %26, %cst_9 [1] : vector<64x32xf32> to vector<64xf32>
    %28 = vector.shape_cast %27 : vector<64xf32> to vector<64x1xf32>
    %cst_10 = arith.constant 3.200000e+01 : f32
    %29 = vector.broadcast %cst_10 : f32 to vector<64x1xf32>
    %30 = arith.divf %28, %29 : vector<64x1xf32>
    %31 = vector.broadcast %23 : vector<64x1xf32> to vector<64x32xf32>
    %32 = arith.subf %17, %31 : vector<64x32xf32>
    %cst_11 = arith.constant 9.99999974E-6 : f32
    %33 = vector.broadcast %cst_11 : f32 to vector<64x1xf32>
    %34 = arith.addf %30, %33 : vector<64x1xf32>
    %35 = math.rsqrt %34 : vector<64x1xf32>
    %36 = vector.broadcast %35 : vector<64x1xf32> to vector<64x32xf32>
    %37 = arith.mulf %32, %36 : vector<64x32xf32>
    %38 = vector.broadcast %18 : vector<1x32xf32> to vector<64x32xf32>
    %39 = arith.mulf %37, %38 : vector<64x32xf32>
    %40 = vector.broadcast %19 : vector<1x32xf32> to vector<64x32xf32>
    %41 = arith.addf %39, %40 : vector<64x32xf32>
    %cst_12 = arith.constant 0.000000e+00 : f32
    %42 = vector.broadcast %cst_12 : f32 to vector<64x32xf32>
    %43 = arith.maximumf %41, %42 : vector<64x32xf32>
    %cst_13 = arith.constant dense<0.000000e+00> : vector<64x32xf32>
    %44 = tpu.matmul %43, %7, %cst_13 {dimension_numbers = #tpu.dot_dimension_numbers<[1], [0], [0], [1], [0, 0, 1, 1], [], []>} : vector<64x32xf32>, vector<32x32xf32>, vector<64x32xf32> -> vector<64x32xf32>
    %45 = vector.extract_strided_slice %3 {offsets = [3, 0], sizes = [1, 32], strides = [1, 1]} : vector<16x32xf32> to vector<1x32xf32>
    %46 = vector.broadcast %45 : vector<1x32xf32> to vector<64x32xf32>
    %47 = arith.addf %44, %46 : vector<64x32xf32>
    %48 = vector.extract_strided_slice %3 {offsets = [4, 0], sizes = [1, 32], strides = [1, 1]} : vector<16x32xf32> to vector<1x32xf32>
    %49 = vector.extract_strided_slice %3 {offsets = [5, 0], sizes = [1, 32], strides = [1, 1]} : vector<16x32xf32> to vector<1x32xf32>
    %cst_14 = arith.constant dense<0.000000e+00> : vector<64xf32>
    %50 = vector.multi_reduction <add>, %47, %cst_14 [1] : vector<64x32xf32> to vector<64xf32>
    %51 = vector.shape_cast %50 : vector<64xf32> to vector<64x1xf32>
    %cst_15 = arith.constant 3.200000e+01 : f32
    %52 = vector.broadcast %cst_15 : f32 to vector<64x1xf32>
    %53 = arith.divf %51, %52 : vector<64x1xf32>
    %54 = vector.broadcast %53 : vector<64x1xf32> to vector<64x32xf32>
    %55 = arith.subf %47, %54 : vector<64x32xf32>
    %56 = arith.mulf %55, %55 : vector<64x32xf32>
    %cst_16 = arith.constant dense<0.000000e+00> : vector<64xf32>
    %57 = vector.multi_reduction <add>, %56, %cst_16 [1] : vector<64x32xf32> to vector<64xf32>
    %58 = vector.shape_cast %57 : vector<64xf32> to vector<64x1xf32>
    %cst_17 = arith.constant 3.200000e+01 : f32
    %59 = vector.broadcast %cst_17 : f32 to vector<64x1xf32>
    %60 = arith.divf %58, %59 : vector<64x1xf32>
    %61 = vector.broadcast %53 : vector<64x1xf32> to vector<64x32xf32>
    %62 = arith.subf %47, %61 : vector<64x32xf32>
    %cst_18 = arith.constant 9.99999974E-6 : f32
    %63 = vector.broadcast %cst_18 : f32 to vector<64x1xf32>
    %64 = arith.addf %60, %63 : vector<64x1xf32>
    %65 = math.rsqrt %64 : vector<64x1xf32>
    %66 = vector.broadcast %65 : vector<64x1xf32> to vector<64x32xf32>
    %67 = arith.mulf %62, %66 : vector<64x32xf32>
    %68 = vector.broadcast %48 : vector<1x32xf32> to vector<64x32xf32>
    %69 = arith.mulf %67, %68 : vector<64x32xf32>
    %70 = vector.broadcast %49 : vector<1x32xf32> to vector<64x32xf32>
    %71 = arith.addf %69, %70 : vector<64x32xf32>
    %cst_19 = arith.constant 0.000000e+00 : f32
    %72 = vector.broadcast %cst_19 : f32 to vector<64x32xf32>
    %73 = arith.maximumf %71, %72 : vector<64x32xf32>
    %74 = vector.shape_cast %73 : vector<64x32xf32> to vector<8x8x32xf32>
    %cst_20 = arith.constant dense<0xFF800000> : vector<8x32xf32>
    %75 = vector.multi_reduction <maximumf>, %74, %cst_20 [1] : vector<8x8x32xf32> to vector<8x32xf32>
    %cst_21 = arith.constant dense<0.000000e+00> : vector<8x32xf32>
    %76 = tpu.matmul %75, %11, %cst_21 {dimension_numbers = #tpu.dot_dimension_numbers<[1], [0], [0], [1], [0, 0, 1, 1], [], []>} : vector<8x32xf32>, vector<32x32xf32>, vector<8x32xf32> -> vector<8x32xf32>
    %cst_22 = arith.constant dense<0.000000e+00> : vector<64x32xf32>
    %77 = tpu.matmul %73, %9, %cst_22 {dimension_numbers = #tpu.dot_dimension_numbers<[1], [0], [0], [1], [0, 0, 1, 1], [], []>} : vector<64x32xf32>, vector<32x32xf32>, vector<64x32xf32> -> vector<64x32xf32>
    %78 = vector.shape_cast %77 : vector<64x32xf32> to vector<8x8x32xf32>
    %79 = vector.shape_cast %76 : vector<8x32xf32> to vector<8x1x32xf32>
    %80 = vector.broadcast %79 : vector<8x1x32xf32> to vector<8x8x32xf32>
    %81 = arith.addf %78, %80 : vector<8x8x32xf32>
    %82 = vector.shape_cast %81 : vector<8x8x32xf32> to vector<64x32xf32>
    %83 = vector.extract_strided_slice %3 {offsets = [6, 0], sizes = [1, 32], strides = [1, 1]} : vector<16x32xf32> to vector<1x32xf32>
    %84 = vector.broadcast %83 : vector<1x32xf32> to vector<64x32xf32>
    %85 = arith.addf %82, %84 : vector<64x32xf32>
    %86 = vector.extract_strided_slice %3 {offsets = [7, 0], sizes = [1, 32], strides = [1, 1]} : vector<16x32xf32> to vector<1x32xf32>
    %87 = vector.extract_strided_slice %3 {offsets = [8, 0], sizes = [1, 32], strides = [1, 1]} : vector<16x32xf32> to vector<1x32xf32>
    %cst_23 = arith.constant dense<0.000000e+00> : vector<64xf32>
    %88 = vector.multi_reduction <add>, %85, %cst_23 [1] : vector<64x32xf32> to vector<64xf32>
    %89 = vector.shape_cast %88 : vector<64xf32> to vector<64x1xf32>
    %cst_24 = arith.constant 3.200000e+01 : f32
    %90 = vector.broadcast %cst_24 : f32 to vector<64x1xf32>
    %91 = arith.divf %89, %90 : vector<64x1xf32>
    %92 = vector.broadcast %91 : vector<64x1xf32> to vector<64x32xf32>
    %93 = arith.subf %85, %92 : vector<64x32xf32>
    %94 = arith.mulf %93, %93 : vector<64x32xf32>
    %cst_25 = arith.constant dense<0.000000e+00> : vector<64xf32>
    %95 = vector.multi_reduction <add>, %94, %cst_25 [1] : vector<64x32xf32> to vector<64xf32>
    %96 = vector.shape_cast %95 : vector<64xf32> to vector<64x1xf32>
    %cst_26 = arith.constant 3.200000e+01 : f32
    %97 = vector.broadcast %cst_26 : f32 to vector<64x1xf32>
    %98 = arith.divf %96, %97 : vector<64x1xf32>
    %99 = vector.broadcast %91 : vector<64x1xf32> to vector<64x32xf32>
    %100 = arith.subf %85, %99 : vector<64x32xf32>
    %cst_27 = arith.constant 9.99999974E-6 : f32
    %101 = vector.broadcast %cst_27 : f32 to vector<64x1xf32>
    %102 = arith.addf %98, %101 : vector<64x1xf32>
    %103 = math.rsqrt %102 : vector<64x1xf32>
    %104 = vector.broadcast %103 : vector<64x1xf32> to vector<64x32xf32>
    %105 = arith.mulf %100, %104 : vector<64x32xf32>
    %106 = vector.broadcast %86 : vector<1x32xf32> to vector<64x32xf32>
    %107 = arith.mulf %105, %106 : vector<64x32xf32>
    %108 = vector.broadcast %87 : vector<1x32xf32> to vector<64x32xf32>
    %109 = arith.addf %107, %108 : vector<64x32xf32>
    %cst_28 = arith.constant 0.000000e+00 : f32
    %110 = vector.broadcast %cst_28 : f32 to vector<64x32xf32>
    %111 = arith.maximumf %109, %110 : vector<64x32xf32>
    %cst_29 = arith.constant dense<0.000000e+00> : vector<64x32xf32>
    %112 = tpu.matmul %111, %13, %cst_29 {dimension_numbers = #tpu.dot_dimension_numbers<[1], [0], [0], [1], [0, 0, 1, 1], [], []>} : vector<64x32xf32>, vector<32x32xf32>, vector<64x32xf32> -> vector<64x32xf32>
    %113 = vector.extract_strided_slice %3 {offsets = [9, 0], sizes = [1, 32], strides = [1, 1]} : vector<16x32xf32> to vector<1x32xf32>
    %114 = vector.broadcast %113 : vector<1x32xf32> to vector<64x32xf32>
    %115 = arith.addf %112, %114 : vector<64x32xf32>
    %116 = vector.extract_strided_slice %3 {offsets = [10, 0], sizes = [1, 32], strides = [1, 1]} : vector<16x32xf32> to vector<1x32xf32>
    %117 = vector.extract_strided_slice %3 {offsets = [11, 0], sizes = [1, 32], strides = [1, 1]} : vector<16x32xf32> to vector<1x32xf32>
    %cst_30 = arith.constant dense<0.000000e+00> : vector<64xf32>
    %118 = vector.multi_reduction <add>, %115, %cst_30 [1] : vector<64x32xf32> to vector<64xf32>
    %119 = vector.shape_cast %118 : vector<64xf32> to vector<64x1xf32>
    %cst_31 = arith.constant 3.200000e+01 : f32
    %120 = vector.broadcast %cst_31 : f32 to vector<64x1xf32>
    %121 = arith.divf %119, %120 : vector<64x1xf32>
    %122 = vector.broadcast %121 : vector<64x1xf32> to vector<64x32xf32>
    %123 = arith.subf %115, %122 : vector<64x32xf32>
    %124 = arith.mulf %123, %123 : vector<64x32xf32>
    %cst_32 = arith.constant dense<0.000000e+00> : vector<64xf32>
    %125 = vector.multi_reduction <add>, %124, %cst_32 [1] : vector<64x32xf32> to vector<64xf32>
    %126 = vector.shape_cast %125 : vector<64xf32> to vector<64x1xf32>
    %cst_33 = arith.constant 3.200000e+01 : f32
    %127 = vector.broadcast %cst_33 : f32 to vector<64x1xf32>
    %128 = arith.divf %126, %127 : vector<64x1xf32>
    %129 = vector.broadcast %121 : vector<64x1xf32> to vector<64x32xf32>
    %130 = arith.subf %115, %129 : vector<64x32xf32>
    %cst_34 = arith.constant 9.99999974E-6 : f32
    %131 = vector.broadcast %cst_34 : f32 to vector<64x1xf32>
    %132 = arith.addf %128, %131 : vector<64x1xf32>
    %133 = math.rsqrt %132 : vector<64x1xf32>
    %134 = vector.broadcast %133 : vector<64x1xf32> to vector<64x32xf32>
    %135 = arith.mulf %130, %134 : vector<64x32xf32>
    %136 = vector.broadcast %116 : vector<1x32xf32> to vector<64x32xf32>
    %137 = arith.mulf %135, %136 : vector<64x32xf32>
    %138 = vector.broadcast %117 : vector<1x32xf32> to vector<64x32xf32>
    %139 = arith.addf %137, %138 : vector<64x32xf32>
    %cst_35 = arith.constant 0.000000e+00 : f32
    %140 = vector.broadcast %cst_35 : f32 to vector<64x32xf32>
    %141 = arith.maximumf %139, %140 : vector<64x32xf32>
    %142 = arith.addf %1, %141 : vector<64x32xf32>
    %143 = vector.extract_strided_slice %3 {offsets = [12, 0], sizes = [1, 32], strides = [1, 1]} : vector<16x32xf32> to vector<1x32xf32>
    %144 = vector.extract_strided_slice %3 {offsets = [13, 0], sizes = [1, 32], strides = [1, 1]} : vector<16x32xf32> to vector<1x32xf32>
    %cst_36 = arith.constant dense<0.000000e+00> : vector<64xf32>
    %145 = vector.multi_reduction <add>, %142, %cst_36 [1] : vector<64x32xf32> to vector<64xf32>
    %146 = vector.shape_cast %145 : vector<64xf32> to vector<64x1xf32>
    %cst_37 = arith.constant 3.200000e+01 : f32
    %147 = vector.broadcast %cst_37 : f32 to vector<64x1xf32>
    %148 = arith.divf %146, %147 : vector<64x1xf32>
    %149 = vector.broadcast %148 : vector<64x1xf32> to vector<64x32xf32>
    %150 = arith.subf %142, %149 : vector<64x32xf32>
    %151 = arith.mulf %150, %150 : vector<64x32xf32>
    %cst_38 = arith.constant dense<0.000000e+00> : vector<64xf32>
    %152 = vector.multi_reduction <add>, %151, %cst_38 [1] : vector<64x32xf32> to vector<64xf32>
    %153 = vector.shape_cast %152 : vector<64xf32> to vector<64x1xf32>
    %cst_39 = arith.constant 3.200000e+01 : f32
    %154 = vector.broadcast %cst_39 : f32 to vector<64x1xf32>
    %155 = arith.divf %153, %154 : vector<64x1xf32>
    %156 = vector.broadcast %148 : vector<64x1xf32> to vector<64x32xf32>
    %157 = arith.subf %142, %156 : vector<64x32xf32>
    %cst_40 = arith.constant 9.99999974E-6 : f32
    %158 = vector.broadcast %cst_40 : f32 to vector<64x1xf32>
    %159 = arith.addf %155, %158 : vector<64x1xf32>
    %160 = math.rsqrt %159 : vector<64x1xf32>
    %161 = vector.broadcast %160 : vector<64x1xf32> to vector<64x32xf32>
    %162 = arith.mulf %157, %161 : vector<64x32xf32>
    %163 = vector.broadcast %143 : vector<1x32xf32> to vector<64x32xf32>
    %164 = arith.mulf %162, %163 : vector<64x32xf32>
    %165 = vector.broadcast %144 : vector<1x32xf32> to vector<64x32xf32>
    %166 = arith.addf %164, %165 : vector<64x32xf32>
    %167 = vector.shape_cast %166 : vector<64x32xf32> to vector<8x8x32xf32>
    %c0_41 = arith.constant 0 : index
    %c0_42 = arith.constant 0 : index
    %c0_43 = arith.constant 0 : index
    %168 = vector.load %arg4[%c0_41, %c0_42, %c0_43] : memref<8x8x32xf32, #tpu.memory_space<vmem>>, vector<8x8x32xf32>
    tpu.vector_store %arg4[%c0_41, %c0_42, %c0_43], %167 {strides = array<i32>} : memref<8x8x32xf32, #tpu.memory_space<vmem>>, vector<8x8x32xf32>,
    return
  }
  func.func @transform_0(%arg0: i32) -> (i32, i32, i32) {
    %c0_i32 = arith.constant 0 : i32
    %c0_i32_0 = arith.constant 0 : i32
    %c0_i32_1 = arith.constant 0 : i32
    return %arg0, %c0_i32, %c0_i32_0 : i32, i32, i32
  }
  func.func @transform_1(%arg0: i32) -> (i32, i32, i32) {
    %c0_i32 = arith.constant 0 : i32
    %c0_i32_0 = arith.constant 0 : i32
    %c0_i32_1 = arith.constant 0 : i32
    %c0_i32_2 = arith.constant 0 : i32
    return %c0_i32, %c0_i32_0, %c0_i32_1 : i32, i32, i32
  }
  func.func @transform_2(%arg0: i32) -> (i32, i32) {
    %c0_i32 = arith.constant 0 : i32
    %c0_i32_0 = arith.constant 0 : i32
    %c0_i32_1 = arith.constant 0 : i32
    return %c0_i32, %c0_i32_0 : i32, i32
  }
  func.func @transform_3(%arg0: i32) -> (i32, i32, i32) {
    %c0_i32 = arith.constant 0 : i32
    %c0_i32_0 = arith.constant 0 : i32
    %c0_i32_1 = arith.constant 0 : i32
    return %arg0, %c0_i32, %c0_i32_0 : i32, i32, i32
  }
}

</mosaic_0001>

<bundles_post_ra>
// kernel: tpu_custom_call.1
= control target key start
LH: loop header
LB: loop body
LE: loop exit
PB: predicated region body
PF: predicated region fallthrough
CT: control target
= control target key end

     0   :  { %8 = vsyncpa [#allocation3], 0  ;;  %s3133_s0 = inlined_call_operand.hbm [shape: f32[16,8,32], index: 0, kind: input, shape index: {}]   ;;  %s3134_s1 = inlined_call_operand.hbm [shape: f32[5,32,32], index: 1, kind: input, shape index: {}]   ;;  %s3135_s2 = inlined_call_operand.hbm [shape: f32[16,32], index: 2, kind: input, shape index: {}]   ;;  %s3136_s3 = inlined_call_operand.hbm [shape: f32[16,8,32], index: 3, kind: output, shape index: {}]  }
   0x1   :  { %10 = vsyncpa [#allocation3 + $0x1], 0 }
   0x2   :  { %11 = vsyncpa [#allocation6], 0 }
   0x3   :  { %12 = vsyncpa [#allocation4], 0 }
   0x4   :  { %14 = vsyncpa [#allocation4 + $0x1], 0  ;;  %s2427_s12 = smov 0   ;;  %s2429_s13 = smov 0  }
   0x5   :  { %s2431_s14 = smov 0   ;;  %s2433_s15 = smov 0  }
   0x6 LB: > { %s2448_s16 = sadd.s32 4294967295, %s2393_s15   ;;  %s1834_s17 = sadd.s32 4294967294, %s2393_s15   ;;  %s2393_s15 = sphi %s2433_s15, %s3156_s15   ;;  %s2389_s14 = sphi %s2431_s14, %s3155_s14   ;;  %s2385_s13 = sphi %s2429_s13, %s3154_s13   ;;  %s2381_s12 = sphi %s2427_s12, %s3153_s12  }
   0x7   : > { %p40_p0 = scmp.ne.s32.totalorder %s2385_s13, %s2381_s12  ;;  %p3137_p1 = scmp.eq.s32.totalorder %s2448_s16, 0 }
   0x8   : > { %p112_p3 = scmp.eq.s32.totalorder %s1834_s17, 1  ;;  %p1835_p5 = scmp.ge.s32.totalorder %s2393_s15, 1 }
   0x9   : > { %p2457_p4 = por %p3137_p1, %p40_p0  ;;  %p119_p7 = scmp.lt.s32.totalorder %s2393_s15, 3 }
   0xa   : > { %p2462_p6 = por %p112_p3, %p40_p0  ;;  %s2395_s21 = smov [#allocation5]  }
   0xb   : > { %s3140_s18 = scalar_select %p2457_p4, 1, 0 }
   0xc   : > { %s3141_s19 = scalar_select %p2462_p6, 1, 0 }
   0xd   : > { %p2467_p8 = pnand %p1835_p5, %p119_p7  ;;  %s131_s22 = sshll.u32 %s2395_s21, 4  ;;  %s2471_s22 = int_to_ptr.vmem [resolvable:$true] %s131_s22 }
   0xe   : > { %s2396_s24 = smov [#allocation7]   ;;  %s2237_s28 = scalar_lea.hbm %s3134_s1, 2560 }
   0xf   : > { %p2085_p9 = pneg %p2467_p8  ;;  %s144_s25 = sshll.u32 %s2396_s24, 4  ;;  %s2482_s25 = int_to_ptr.vmem [resolvable:$true] %s144_s25 }
  0x10   : > { %p2238_p12 = scmp.ne.s32.totalorder %s3134_s1, %s2237_s28  ;;  %p2244_p5 = scmp.lt.u32.totalorder %s2237_s28, %s3134_s1 }
  0x11   : > { %p2478_p11 = pnand %p2085_p9, %p3137_p1 }
  0x13   : > { %p2239_p13 = pneg %p2478_p11 }
  0x15   : > { %p2240_p0 = pnand %p2239_p13, %p2238_p12 }
  0x17   : > { %p2241_p3 = pneg %p2240_p0 }
  0x19   : > { %p2246_p7 = pnand %p2244_p5, %p2241_p3 }
  0x1b   : > { %2249 = shalt.err (!%p2246_p7)
}
  0x1c   : > { %s2250_s6 = scalar_lea.vmem %s2471_s22, 2560  ;;  %p2258_p2 = scmp.lt.s32.totalorder %s2471_s22, %s2471_s22 }
  0x1d   : > { %p2251_p9 = scmp.ne.s32.totalorder %s2471_s22, %s2250_s6  ;;  %p2259_p12 = scmp.lt.s32.totalorder %s2250_s6, %s2250_s6 }
  0x1f   : > { %p2253_p10 = pnand %p2251_p9, %p2239_p13  ;;  %p2260_p0 = por %p2259_p12, %p2258_p2 }
  0x21   : > { %p2254_p1 = pneg %p2253_p10 }
  0x23   : > { %p2261_p6 = pnand %p2260_p0, %p2254_p1 }
  0x25   : > { %2264 = shalt.err (!%p2261_p6)
}
  0x26   : > { %s2397_s7 = smov 128   ;;  %s2398_s8 = smov 8  }
  0x27   : > { %2088 = dma.hbm_to_vmem [thread:$0]  (!%p2478_p11), %s3134_s1, 2560, %s2471_s22, [#allocation6], %s2397_s7, %s2397_s7, %s2398_s8  }
  0x28   : > { %s2265_s21 = scalar_lea.hbm %s3135_s2, 256 }
  0x29   : > { %p2266_p1 = scmp.ne.s32.totalorder %s3135_s2, %s2265_s21  ;;  %p2272_p10 = scmp.lt.u32.totalorder %s2265_s21, %s3135_s2 }
  0x2b   : > { %p2268_p2 = pnand %p2266_p1, %p2239_p13 }
  0x2d   : > { %p2269_p6 = pneg %p2268_p2 }
  0x2f   : > { %p2274_p3 = pnand %p2272_p10, %p2269_p6 }
  0x31   : > { %2277 = shalt.err (!%p2274_p3)
}
  0x32   : > { %s2278_s22 = scalar_lea.vmem %s2482_s25, 256  ;;  %p2286_p12 = scmp.lt.s32.totalorder %s2482_s25, %s2482_s25 }
  0x33   : > { %p2279_p5 = scmp.ne.s32.totalorder %s2482_s25, %s2278_s22  ;;  %p2287_p0 = scmp.lt.s32.totalorder %s2278_s22, %s2278_s22 }
  0x35   : > { %p2281_p7 = pnand %p2279_p5, %p2239_p13  ;;  %p2288_p1 = por %p2287_p0, %p2286_p12 }
  0x37   : > { %p2282_p9 = pneg %p2281_p7 }
  0x39   : > { %p2289_p2 = pnand %p2288_p1, %p2282_p9 }
  0x3b   : > { %2292 = shalt.err (!%p2289_p2)
}
  0x3c   : > { %2091 = dma.hbm_to_vmem [thread:$0]  (!%p2478_p11), %s3135_s2, 256, %s2482_s25, [#allocation6], %s2397_s7, %s2397_s7, %s2398_s8  }
  0x3d   : > { %s2543_s23 = sadd.s32 1, %s2393_s15   ;;  %s27_s4 = sadd.s32 1, %s2389_s14 }
  0x3e   : > { %s24_s5 = ssub.s32 %s2393_s15, %s2543_s23  ;;  %p34_p13 = scmp.ne.s32.totalorder %s2389_s14, %s2385_s13 }
  0x3f   : > { %p25_p6 = scmp.eq.s32.totalorder %s24_s5, 0  ;;  %p35_p10 = scmp.eq.s32.totalorder %s2393_s15, 0 }
  0x40   : > { %p3144_p3 = scmp.eq.s32.totalorder %s2448_s16, 1  ;;  %p2102_p7 = scmp.lt.s32.totalorder %s2393_s15, 2 }
  0x41   : > { %s2559_s9 = scalar_select %p25_p6, %s2389_s14, %s27_s4  }
  0x42   : > { %p2553_p5 = por %p3144_p3, %p34_p13  ;;  %p36_p9 = por %p35_p10, %p34_p13 }
  0x43   : > { %s158_s10 = sand.u32 1, %s2389_s14   ;;  %s1885_s25 = sshll.u32 %s2393_s15, 10 }
  0x44   : > { %s3145_s6 = scalar_select %p2553_p5, 1, 0 }
  0x45   : > { %s1839_s11 = sshll.u32 %s158_s10, 6  ;;  %s2566_s24 = scalar_lea.hbm %s3133_s0, %s1885_s25 }
  0x46   : > { %s162_s26 = scalar_lea.vmem [#allocation2], %s1839_s11  ;;  %p2570_p11 = pnand %p2102_p7, %p36_p9 }
  0x47   : > { %s169_s27 = sshll.u32 %s162_s26, 4  ;;  %s2574_s22 = scalar_lea.sflag [#allocation3], %s158_s10  ;;  %s2568_s27 = int_to_ptr.vmem [resolvable:$true] %s169_s27 }
  0x48   : > { %s2293_s29 = scalar_lea.hbm %s2566_s24, 1024  ;;  %p2295_p0 = pneg %p2570_p11 }
  0x49   : > { %p2294_p12 = scmp.ne.s32.totalorder %s2566_s24, %s2293_s29  ;;  %s2298_s5 = scalar_lea.hbm %s3133_s0, 2048 }
  0x4a   : > { %p2299_p13 = scmp.lt.u32.totalorder %s2566_s24, %s3133_s0  ;;  %p2300_p6 = scmp.lt.u32.totalorder %s2298_s5, %s2293_s29 }
  0x4b   : > { %p2296_p1 = pnand %p2295_p0, %p2294_p12  ;;  %p2302_p3 = scmp.lt.u32.totalorder %s2293_s29, %s2566_s24 }
  0x4c   : > { %p2301_p10 = por %p2300_p6, %p2299_p13 }
  0x4d   : > { %p2297_p2 = pneg %p2296_p1 }
  0x4e   : > { %p2303_p7 = por %p2302_p3, %p2301_p10 }
  0x50   : > { %p2304_p9 = pnand %p2303_p7, %p2297_p2 }
  0x52   : > { %2307 = shalt.err (!%p2304_p9)
}
  0x53   : > { %s2308_s10 = scalar_lea.vmem %s2568_s27, 1024  ;;  %s2399_s17 = smov [#allocation2]  }
  0x54   : > { %p2309_p12 = scmp.ne.s32.totalorder %s2568_s27, %s2308_s10  ;;  %s2313_s21 = sshll.u32 %s2399_s17, 4  ;;  %s2314_s21 = int_to_ptr.vmem [resolvable:$false] %s2313_s21 }
  0x55   : > { %s2315_s26 = scalar_lea.vmem %s2314_s21, 2048  ;;  %p2316_p4 = scmp.lt.s32.totalorder %s2568_s27, %s2314_s21 }
  0x56   : > { %p2311_p1 = pnand %p2309_p12, %p2295_p0  ;;  %p2317_p13 = scmp.lt.s32.totalorder %s2315_s26, %s2308_s10 }
  0x58   : > { %p2312_p5 = pneg %p2311_p1  ;;  %p2318_p6 = por %p2317_p13, %p2316_p4 }
  0x5a   : > { %p2319_p10 = pnand %p2318_p6, %p2312_p5 }
  0x5c   : > { %2322 = shalt.err (!%p2319_p10)
}
  0x5d   : > { %2095 = dma.hbm_to_vmem [thread:$0]  (!%p2570_p11), %s2566_s24, 1024, %s2568_s27, %s2574_s22, %s2397_s7, %s2397_s7, %s2398_s8  }
  0x5e   : > { %181 = sbr.rel (%p2467_p8) target bundleno = 2622 (0xa3e), region = 32  ;;  %s2608_s29 = sand.u32 (!%p2467_p8), 1, %s2385_s13  }
  0x5f   : > { %s1843_s30 = sshll.u32 (!%p2467_p8), %s2608_s29, 6  ;;  %s184_s4 = scalar_lea.sflag (!%p2467_p8), [#allocation3], %s2608_s29 }
  0x60   : > { %s2614_s28 = scalar_lea.vmem (!%p2467_p8), [#allocation2], %s1843_s30  ;;  %p3147_p4 = scmp.ne.s32.totalorder (!%p2467_p8), %s3140_s18, 0 }
  0x65   : > { %2368 = dma.done.wait (%p3147_p4), %s184_s4, 1024  }
  0x66   : > { %2370 = vsyncadd (%p3147_p4), %s184_s4, 4294966272  ;;  %p3148_p5 = scmp.eq.s32.totalorder %s2448_s16, 0 }
  0x68   : > { %2372 = dma.done.wait (%p3148_p5), [#allocation6], 2816   ;;  %p3149_p8 = pmov %p3148_p5 }
  0x69   : > { %vm254_vm0 = vcmask 261120   ;;  %v228_v0 = vld [vmem:[#allocation5] sm:$0xff]  ;;  %v229_v1 = vld [vmem:[#allocation5 + $0x8] sm:$0xff]  ;;  %v230_v2 = vld [vmem:[#allocation5 + $0x10] sm:$0xff]  ;;  %v250_v14 = vlaneseq  ;;  %vm2401_vm1 = vmmov 0   ;;  %vm854_vm2 = vcmask 1041409  }
  0x6a   : > { %2374 = vsyncadd (%p3149_p8), [#allocation6], 4294964480  ;;  %v2031_v3 = vpack.c.bf16 %v229_v1, %v228_v0  ;;  %v231_v4 = vld [vmem:[#allocation5 + $0x18] sm:$0xff]  ;;  %v220_v5 = vld [vmem:[%s2614_s28] sm:$0xff]  ;;  %vm856_vm3 = vcmask 1042434   ;;  %vm858_vm4 = vcmask 1043459  }
  0x6b   : > { %v2035_v6 = vpack.c.bf16 %v231_v4, %v230_v2  ;;  %1948 = vmatprep.mubr.msk.f32.mxu0 %vm254_vm0, %v220_v5  ;;  %v221_v7 = vld [vmem:[%s2614_s28 + $0x8] sm:$0xff]  ;;  %v222_v8 = vld [vmem:[%s2614_s28 + $0x10] sm:$0xff]  ;;  %v223_v9 = vld [vmem:[%s2614_s28 + $0x18] sm:$0xff]  ;;  %v2640_v15 = vshrl.u32 %v250_v14, 7  ;;  %vm860_vm5 = vcmask 1044484   ;;  %vm862_vm6 = vcmask 1045509  }
  0x6c   : > { %2032 = vmatprep.subr.bf16.mxu0 %v2031_v3  ;;  %v224_v10 = vld [vmem:[%s2614_s28 + $0x20] sm:$0xff]  ;;  %v225_v11 = vld [vmem:[%s2614_s28 + $0x28] sm:$0xff]  ;;  %v226_v12 = vld [vmem:[%s2614_s28 + $0x30] sm:$0xff]  ;;  %vm864_vm7 = vcmask 1046534   ;;  %vm866_vm8 = vcmask 1047559   ;;  %s3060_s18 = scalar_lea.vmem [#allocation8], %s1843_s30 }
  0x6d   : > { %2034 = vmatpush3.bf16.msra.mxu0 %v2031_v3  ;;  %v227_v13 = vld [vmem:[%s2614_s28 + $0x38] sm:$0xff]  ;;  %v2643_v16 = vsub.s32 0, %v2640_v15  ;;  %v2645_v17 = vld [vmem:[#allocation7] sm:$0xff]  ;;  %s1886_s20 = sshll.u32 %s2448_s16, 10  ;;  %s1742_s7 = sshll.u32 %s3060_s18, 4  ;;  %s3085_s7 = int_to_ptr.vmem [resolvable:$true] %s1742_s7 }
  0x6e   : > { %2036 = vmatprep.subr.bf16.mxu0 %v2035_v6  ;;  %s3083_s27 = scalar_lea.hbm %s3136_s3, %s1886_s20  ;;  %s1729_s16 = scalar_lea.sflag [#allocation4], %s2608_s29 }
  0x6f   : > { %v253_v18 = vrot.slane %v2645_v17, %v2643_v16  ;;  %s2323_s22 = scalar_lea.vmem %s3085_s7, 1024  ;;  %p3150_p0 = scmp.ne.s32.totalorder %s3145_s6, 0 }
  0x70   : > { %p2324_p11 = scmp.ne.s32.totalorder %s3085_s7, %s2323_s22  ;;  %s2404_s5 = smov [#allocation8]  }
  0x71   : > { %2038 = vmatpush3.bf16.msra.mxu0 %v2035_v6  ;;  %s2327_s11 = sshll.u32 %s2404_s5, 4  ;;  %s2328_s11 = int_to_ptr.vmem [resolvable:$false] %s2327_s11 }
  0x72   : > { %p2325_p2 = pnand %p2324_p11, %p3150_p0  ;;  %s2329_s25 = scalar_lea.vmem %s2328_s11, 2048 }
  0x73   : > { %p2330_p7 = scmp.lt.s32.totalorder %s3085_s7, %s2328_s11  ;;  %p2331_p9 = scmp.lt.s32.totalorder %s2329_s25, %s2323_s22 }
  0x74   : > { %1949 = vmatmul.mubr.msk.f32.vlgmr.msra.gmra.mrb[0].mxu0 %vm254_vm0, %v221_v7  ;;  %p2326_p3 = pneg %p2325_p2 }
  0x75   : > { %1951 = vmatprep.mubr.msk.f32.mxu0 %vm254_vm0, %v222_v8  ;;  %p2332_p12 = por %p2331_p9, %p2330_p7 }
  0x77   : > { %p2333_p1 = pnand %p2332_p12, %p2326_p3 }
  0x78   : > { %1952 = vmatmul.mubr.msk.f32.gmra.mrb[2].mxu0 %vm254_vm0, %v223_v9 }
  0x79   : > { %1954 = vmatprep.mubr.msk.f32.mxu0 %vm254_vm0, %v224_v10 }
  0x7c   : > { %1955 = vmatmul.mubr.msk.f32.gmra.mrb[4].mxu0 %vm254_vm0, %v225_v11 }
  0x7d   : > { %1957 = vmatprep.mubr.msk.f32.mxu0 %vm254_vm0, %v226_v12 }
  0x80   : > { %1958 = vmatmul.mubr.msk.f32.gmra.mrb[6].mxu0 %vm254_vm0, %v227_v13 }
 0x147   : > { %v1950_v19 = vpop.f32.mrb[0].mxu0 }
 0x148   : > { %v345_v20 = vpop.f32.mrb[1].mxu0  ;;  %v351_v22 = vadd.f32 %v1950_v19, %v253_v18 }
 0x149   : > { %v346_v21 = vadd.f32 %v345_v20, %v253_v18 }
 0x14a   : > { %v387_v30 = vsel %vm254_vm0, %v351_v22, 0.0 }
 0x14b   : > { %v1953_v23 = vpop.f32.mrb[2].mxu0  ;;  %v384_v24 = vsel %vm254_vm0, %v346_v21, 0.0 }
 0x14c   : > { %v355_v25 = vpop.f32.mrb[3].mxu0  ;;  %385 = vadd.xlane.f32.xlu0 %v384_v24  ;;  %v361_v27 = vadd.f32 %v1953_v23, %v253_v18  ;;  %v233_v23 = vld [vmem:[#allocation5 + $0x28] sm:$0xff] }
 0x14d   : > { %v356_v26 = vadd.f32 %v355_v25, %v253_v18  ;;  %v234_v25 = vld [vmem:[#allocation5 + $0x30] sm:$0xff] }
 0x14e   : > { %v393_v35 = vsel %vm254_vm0, %v361_v27, 0.0 }
 0x14f   : > { %v1956_v28 = vpop.f32.mrb[4].mxu0  ;;  %v390_v29 = vsel %vm254_vm0, %v356_v26, 0.0 }
 0x150   : > { %v365_v31 = vpop.f32.mrb[5].mxu0  ;;  %391 = vadd.xlane.f32.xlu1 %v390_v29  ;;  %388 = vadd.xlane.f32.xlu0 %v387_v30  ;;  %v371_v33 = vadd.f32 %v1956_v28, %v253_v18 }
 0x151   : > { %v366_v32 = vadd.f32 %v365_v31, %v253_v18 }
 0x152   : > { %v399_v40 = vsel %vm254_vm0, %v371_v33, 0.0 }
 0x153   : > { %v1959_v34 = vpop.f32.mrb[6].mxu0  ;;  %v396_v36 = vsel %vm254_vm0, %v366_v32, 0.0 }
 0x154   : > { %v375_v37 = vpop.f32.mrb[7].mxu0  ;;  %394 = vadd.xlane.f32.xlu1 %v393_v35  ;;  %397 = vadd.xlane.f32.xlu0 %v396_v36  ;;  %v381_v39 = vadd.f32 %v1959_v34, %v253_v18 }
 0x155   : > { %v376_v38 = vadd.f32 %v375_v37, %v253_v18 }
 0x156   : > { %v405_v42 = vsel %vm254_vm0, %v381_v39, 0.0 }
 0x157   : > { %v402_v41 = vsel %vm254_vm0, %v376_v38, 0.0 }
 0x158   : > { %400 = vadd.xlane.f32.xlu1 %v399_v40  ;;  %403 = vadd.xlane.f32.xlu0 %v402_v41  ;;  %v491_v41 = vsub.s32 1, %v2640_v15 }
 0x15c   : > { %406 = vadd.xlane.f32.xlu1 %v405_v42 }
 0x1d9   : > { %v386_v43 = vpop.xlane.xlu0 %385 }
 0x1da   : > { %v409_v44 = vmul.f32 0.03125, %v386_v43 }
 0x1dc   : > { %v2657_v45 = vsub.f32 %v346_v21, %v409_v44 }
 0x1dd   : > { %v392_v46 = vpop.xlane.xlu1 %391  ;;  %v389_v47 = vpop.xlane.xlu0 %388 }
 0x1de   : > { %v411_v48 = vmul.f32 0.03125, %v392_v46  ;;  %v410_v49 = vmul.f32 0.03125, %v389_v47  ;;  %v425_v50 = vmul.f32 %v2657_v45, %v2657_v45  ;;  %v503_v47 = vsub.s32 2, %v2640_v15 }
 0x1e0   : > { %v2661_v51 = vsub.f32 %v356_v26, %v411_v48  ;;  %v2663_v52 = vsub.f32 %v351_v22, %v410_v49  ;;  %v433_v53 = vsel %vm254_vm0, %v425_v50, 0.0  ;;  %v232_v22 = vld [vmem:[#allocation5 + $0x20] sm:$0xff]  ;;  %v235_v26 = vld [vmem:[#allocation5 + $0x38] sm:$0xff]  ;;  %v492_v50 = vrot.slane %v2645_v17, %v491_v41 }
 0x1e1   : > { %v395_v54 = vpop.xlane.xlu1 %394  ;;  %434 = vadd.xlane.f32.xlu0 %v433_v53  ;;  %v398_v55 = vpop.xlane.xlu0 %397  ;;  %v2039_v24 = vpack.c.bf16 %v233_v23, %v232_v22 }
 0x1e2   : > { %v412_v56 = vmul.f32 0.03125, %v395_v54  ;;  %v413_v57 = vmul.f32 0.03125, %v398_v55  ;;  %v427_v58 = vmul.f32 %v2661_v51, %v2661_v51  ;;  %v426_v59 = vmul.f32 %v2663_v52, %v2663_v52 }
 0x1e3   : > { %2040 = vmatprep.subr.bf16.mxu1 %v2039_v24 }
 0x1e4   : > { %v2670_v60 = vsub.f32 %v361_v27, %v412_v56  ;;  %v2672_v61 = vsub.f32 %v366_v32, %v413_v57  ;;  %v439_v62 = vsel %vm254_vm0, %v427_v58, 0.0  ;;  %v436_v63 = vsel %vm254_vm0, %v426_v59, 0.0  ;;  %2042 = vmatpush3.bf16.msra.mxu1 %v2039_v24 }
 0x1e5   : > { %v401_v0 = vpop.xlane.xlu1 %400  ;;  %440 = vadd.xlane.f32.xlu0 %v439_v62  ;;  %437 = vadd.xlane.f32.xlu1 %v436_v63  ;;  %v404_v1 = vpop.xlane.xlu0 %403  ;;  %v2043_v27 = vpack.c.bf16 %v235_v26, %v234_v25  ;;  %v504_v58 = vrot.slane %v2645_v17, %v503_v47 }
 0x1e6   : > { %v414_v2 = vmul.f32 0.03125, %v401_v0  ;;  %v415_v3 = vmul.f32 0.03125, %v404_v1  ;;  %v428_v4 = vmul.f32 %v2670_v60, %v2670_v60  ;;  %v429_v5 = vmul.f32 %v2672_v61, %v2672_v61 }
 0x1e7   : > { %2044 = vmatprep.subr.bf16.mxu1 %v2043_v27 }
 0x1e8   : > { %v2680_v6 = vsub.f32 %v371_v33, %v414_v2  ;;  %v2682_v7 = vsub.f32 %v376_v38, %v415_v3  ;;  %v442_v8 = vsel %vm254_vm0, %v428_v4, 0.0  ;;  %v445_v9 = vsel %vm254_vm0, %v429_v5, 0.0  ;;  %2046 = vmatpush3.bf16.msra.mxu1 %v2043_v27 }
 0x1e9   : > { %v407_v10 = vpop.xlane.xlu1 %406  ;;  %443 = vadd.xlane.f32.xlu1 %v442_v8  ;;  %446 = vadd.xlane.f32.xlu0 %v445_v9 }
 0x1ea   : > { %v416_v11 = vmul.f32 0.03125, %v407_v10  ;;  %v430_v12 = vmul.f32 %v2680_v6, %v2680_v6  ;;  %v431_v13 = vmul.f32 %v2682_v7, %v2682_v7 }
 0x1ec   : > { %v2690_v14 = vsub.f32 %v381_v39, %v416_v11  ;;  %v448_v18 = vsel %vm254_vm0, %v430_v12, 0.0  ;;  %v451_v19 = vsel %vm254_vm0, %v431_v13, 0.0 }
 0x1ed   : > { %449 = vadd.xlane.f32.xlu1 %v448_v18  ;;  %452 = vadd.xlane.f32.xlu0 %v451_v19 }
 0x1ee   : > { %v432_v20 = vmul.f32 %v2690_v14, %v2690_v14 }
 0x1f0   : > { %v454_v21 = vsel %vm254_vm0, %v432_v20, 0.0 }
 0x1f1   : > { %455 = vadd.xlane.f32.xlu1 %v454_v21 }
 0x26e   : > { %v435_v28 = vpop.xlane.xlu0 %434 }
 0x26f   : > { %v457_v29 = vmul.f32 0.03125, %v435_v28 }
 0x271   : > { %v465_v30 = vadd.f32 1e-05, %v457_v29 }
 0x272   : > { %v438_v31 = vpop.xlane.xlu1 %437  ;;  %v441_v32 = vpop.xlane.xlu0 %440 }
 0x273   : > { %2148 = vrsqrt.f32 %v465_v30  ;;  %v458_v33 = vmul.f32 0.03125, %v438_v31  ;;  %v459_v34 = vmul.f32 0.03125, %v441_v32 }
 0x275   : > { %v466_v35 = vadd.f32 1e-05, %v458_v33  ;;  %v467_v36 = vadd.f32 1e-05, %v459_v34 }
 0x276   : > { %v444_v37 = vpop.xlane.xlu1 %443  ;;  %v447_v38 = vpop.xlane.xlu0 %446 }
 0x277   : > { %2150 = vrsqrt.f32 %v466_v35  ;;  %v460_v39 = vmul.f32 0.03125, %v444_v37  ;;  %v461_v40 = vmul.f32 0.03125, %v447_v38 }
 0x278   : > { %2152 = vrsqrt.f32 %v467_v36  ;;  %v523_v36 = vsub.s32 3, %v2640_v15 }
 0x279   : > { %v468_v42 = vadd.f32 1e-05, %v460_v39  ;;  %v469_v43 = vadd.f32 1e-05, %v461_v40 }
 0x27a   : > { %v450_v44 = vpop.xlane.xlu1 %449  ;;  %v453_v46 = vpop.xlane.xlu0 %452 }
 0x27b   : > { %2154 = vrsqrt.f32 %v468_v42  ;;  %v462_v48 = vmul.f32 0.03125, %v450_v44  ;;  %v463_v49 = vmul.f32 0.03125, %v453_v46 }
 0x27c   : > { %2156 = vrsqrt.f32 %v469_v43 }
 0x27d   : > { %v2149_v53 = vpop.eup %2148  ;;  %v470_v54 = vadd.f32 1e-05, %v462_v48  ;;  %v471_v55 = vadd.f32 1e-05, %v463_v49 }
 0x27e   : > { %v456_v56 = vpop.xlane.xlu1 %455  ;;  %v481_v57 = vmul.f32 %v2149_v53, %v2657_v45 }
 0x27f   : > { %2158 = vrsqrt.f32 %v470_v54  ;;  %v464_v59 = vmul.f32 0.03125, %v456_v56 }
 0x280   : > { %2160 = vrsqrt.f32 %v471_v55  ;;  %v493_v62 = vmul.f32 %v492_v50, %v481_v57 }
 0x281   : > { %v2151_v63 = vpop.eup %2150  ;;  %v472_v0 = vadd.f32 1e-05, %v464_v59 }
 0x282   : > { %v2153_v1 = vpop.eup %2152  ;;  %v505_v2 = vadd.f32 %v504_v58, %v493_v62  ;;  %v482_v3 = vmul.f32 %v2151_v63, %v2663_v52 }
 0x283   : > { %2162 = vrsqrt.f32 %v472_v0  ;;  %v483_v4 = vmul.f32 %v2153_v1, %v2661_v51 }
 0x284   : > { %v513_v5 = vmax.f32 %v505_v2, 0.0  ;;  %v494_v8 = vmul.f32 %v492_v50, %v482_v3 }
 0x285   : > { %v2155_v45 = vpop.eup %2154  ;;  %v495_v9 = vmul.f32 %v492_v50, %v483_v4 }
 0x286   : > { %v2157_v10 = vpop.eup %2156  ;;  %1968 = vmatprep.mubr.msk.f32.mxu1 %vm254_vm0, %v513_v5  ;;  %v506_v11 = vadd.f32 %v504_v58, %v494_v8  ;;  %v484_v12 = vmul.f32 %v2155_v45, %v2670_v60 }
 0x287   : > { %v507_v13 = vadd.f32 %v504_v58, %v495_v9  ;;  %v485_v18 = vmul.f32 %v2157_v10, %v2672_v61 }
 0x288   : > { %v514_v19 = vmax.f32 %v506_v11, 0.0  ;;  %v496_v20 = vmul.f32 %v492_v50, %v484_v12 }
 0x289   : > { %v2159_v21 = vpop.eup %2158  ;;  %v515_v52 = vmax.f32 %v507_v13, 0.0  ;;  %v497_v22 = vmul.f32 %v492_v50, %v485_v18 }
 0x28a   : > { %v2161_v23 = vpop.eup %2160  ;;  %1969 = vmatmul.mubr.msk.f32.vlgmr.msra.gmra.mrb[0].mxu1 %vm254_vm0, %v514_v19  ;;  %v508_v51 = vadd.f32 %v504_v58, %v496_v20  ;;  %v486_v24 = vmul.f32 %v2159_v21, %v2680_v6 }
 0x28b   : > { %1971 = vmatprep.mubr.msk.f32.mxu1 %vm254_vm0, %v515_v52  ;;  %v509_v25 = vadd.f32 %v504_v58, %v497_v22  ;;  %v487_v26 = vmul.f32 %v2161_v23, %v2682_v7 }
 0x28c   : > { %v516_v60 = vmax.f32 %v508_v51, 0.0  ;;  %v498_v27 = vmul.f32 %v492_v50, %v486_v24 }
 0x28d   : > { %v2163_v28 = vpop.eup %2162  ;;  %v517_v61 = vmax.f32 %v509_v25, 0.0  ;;  %v499_v29 = vmul.f32 %v492_v50, %v487_v26 }
 0x28e   : > { %1972 = vmatmul.mubr.msk.f32.gmra.mrb[2].mxu1 %vm254_vm0, %v516_v60  ;;  %v510_v30 = vadd.f32 %v504_v58, %v498_v27  ;;  %v488_v31 = vmul.f32 %v2163_v28, %v2690_v14  ;;  %v524_v14 = vrot.slane %v2645_v17, %v523_v36 }
 0x28f   : > { %1974 = vmatprep.mubr.msk.f32.mxu1 %vm254_vm0, %v517_v61  ;;  %v511_v32 = vadd.f32 %v504_v58, %v499_v29 }
 0x290   : > { %v518_v33 = vmax.f32 %v510_v30, 0.0  ;;  %v500_v6 = vmul.f32 %v492_v50, %v488_v31 }
 0x291   : > { %v519_v34 = vmax.f32 %v511_v32, 0.0 }
 0x292   : > { %1975 = vmatmul.mubr.msk.f32.gmra.mrb[4].mxu1 %vm254_vm0, %v518_v33  ;;  %v512_v35 = vadd.f32 %v504_v58, %v500_v6 }
 0x293   : > { %1977 = vmatprep.mubr.msk.f32.mxu1 %vm254_vm0, %v519_v34 }
 0x294   : > { %v520_v7 = vmax.f32 %v512_v35, 0.0 }
 0x296   : > { %1978 = vmatmul.mubr.msk.f32.gmra.mrb[6].mxu1 %vm254_vm0, %v520_v7 }
 0x35d   : > { %v1970_v37 = vpop.f32.mrb[0].mxu1 }
 0x35e   : > { %v621_v38 = vadd.f32 %v1970_v37, %v524_v14  ;;  %v615_v39 = vpop.f32.mrb[1].mxu1 }
 0x35f   : > { %v616_v40 = vadd.f32 %v615_v39, %v524_v14 }
 0x360   : > { %v657_v42 = vsel %vm254_vm0, %v621_v38, 0.0 }
 0x361   : > { %658 = vadd.xlane.f32.xlu1 %v657_v42  ;;  %v1973_v43 = vpop.f32.mrb[2].mxu1  ;;  %v654_v44 = vsel %vm254_vm0, %v616_v40, 0.0 }
 0x362   : > { %v631_v46 = vadd.f32 %v1973_v43, %v524_v14  ;;  %655 = vadd.xlane.f32.xlu0 %v654_v44  ;;  %v625_v48 = vpop.f32.mrb[3].mxu1  ;;  %v236_v44 = vld [vmem:[#allocation5 + $0x40] sm:$0xff] }
 0x363   : > { %v626_v49 = vadd.f32 %v625_v48, %v524_v14 }
 0x364   : > { %v663_v50 = vsel %vm254_vm0, %v631_v46, 0.0 }
 0x365   : > { %664 = vadd.xlane.f32.xlu1 %v663_v50  ;;  %v1976_v53 = vpop.f32.mrb[4].mxu1  ;;  %v660_v54 = vsel %vm254_vm0, %v626_v49, 0.0  ;;  %v239_v50 = vld [vmem:[#allocation5 + $0x58] sm:$0xff] }
 0x366   : > { %v641_v55 = vadd.f32 %v1976_v53, %v524_v14  ;;  %661 = vadd.xlane.f32.xlu0 %v660_v54  ;;  %v635_v56 = vpop.f32.mrb[5].mxu1  ;;  %v240_v54 = vld [vmem:[#allocation5 + $0x60] sm:$0xff] }
 0x367   : > { %v636_v57 = vadd.f32 %v635_v56, %v524_v14 }
 0x368   : > { %v669_v58 = vsel %vm254_vm0, %v641_v55, 0.0 }
 0x369   : > { %670 = vadd.xlane.f32.xlu1 %v669_v58  ;;  %v1979_v59 = vpop.f32.mrb[6].mxu1  ;;  %v666_v62 = vsel %vm254_vm0, %v636_v57, 0.0  ;;  %v242_v58 = vld [vmem:[#allocation5 + $0x70] sm:$0xff] }
 0x36a   : > { %v651_v63 = vadd.f32 %v1979_v59, %v524_v14  ;;  %667 = vadd.xlane.f32.xlu0 %v666_v62  ;;  %v645_v0 = vpop.f32.mrb[7].mxu1  ;;  %v243_v59 = vld [vmem:[#allocation5 + $0x78] sm:$0xff] }
 0x36b   : > { %v646_v1 = vadd.f32 %v645_v0, %v524_v14  ;;  %v2051_v62 = vpack.c.bf16 %v243_v59, %v242_v58 }
 0x36c   : > { %v675_v2 = vsel %vm254_vm0, %v651_v63, 0.0 }
 0x36d   : > { %676 = vadd.xlane.f32.xlu1 %v675_v2  ;;  %v672_v3 = vsel %vm254_vm0, %v646_v1, 0.0 }
 0x36e   : > { %673 = vadd.xlane.f32.xlu0 %v672_v3 }
 0x3ee   : > { %v659_v4 = vpop.xlane.xlu1 %658 }
 0x3ef   : > { %v679_v5 = vmul.f32 0.03125, %v659_v4  ;;  %v656_v8 = vpop.xlane.xlu0 %655 }
 0x3f0   : > { %v678_v45 = vmul.f32 0.03125, %v656_v8 }
 0x3f1   : > { %v2733_v9 = vsub.f32 %v621_v38, %v679_v5 }
 0x3f2   : > { %v2735_v10 = vsub.f32 %v616_v40, %v678_v45  ;;  %v665_v11 = vpop.xlane.xlu1 %664 }
 0x3f3   : > { %v681_v12 = vmul.f32 0.03125, %v665_v11  ;;  %v662_v13 = vpop.xlane.xlu0 %661  ;;  %v695_v18 = vmul.f32 %v2733_v9, %v2733_v9 }
 0x3f4   : > { %v680_v19 = vmul.f32 0.03125, %v662_v13  ;;  %v694_v20 = vmul.f32 %v2735_v10, %v2735_v10 }
 0x3f5   : > { %v2741_v21 = vsub.f32 %v631_v46, %v681_v12  ;;  %v705_v52 = vsel %vm254_vm0, %v695_v18, 0.0  ;;  %v237_v46 = vld [vmem:[#allocation5 + $0x48] sm:$0xff] }
 0x3f6   : > { %v2744_v22 = vsub.f32 %v626_v49, %v680_v19  ;;  %v671_v23 = vpop.xlane.xlu1 %670  ;;  %706 = vadd.xlane.f32.xlu1 %v705_v52  ;;  %v702_v51 = vsel %vm254_vm0, %v694_v20, 0.0  ;;  %v2053_v48 = vpack.c.bf16 %v237_v46, %v236_v44  ;;  %v238_v49 = vld [vmem:[#allocation5 + $0x50] sm:$0xff] }
 0x3f7   : > { %v683_v24 = vmul.f32 0.03125, %v671_v23  ;;  %703 = vadd.xlane.f32.xlu0 %v702_v51  ;;  %v668_v25 = vpop.xlane.xlu0 %667  ;;  %v697_v26 = vmul.f32 %v2741_v21, %v2741_v21  ;;  %v2057_v53 = vpack.c.bf16 %v239_v50, %v238_v49  ;;  %v760_v23 = vsub.s32 4, %v2640_v15 }
 0x3f8   : > { %v682_v60 = vmul.f32 0.03125, %v668_v25  ;;  %v696_v27 = vmul.f32 %v2744_v22, %v2744_v22  ;;  %2054 = vmatprep.subr.bf16.mxu1 %v2053_v48  ;;  %v772_v25 = vsub.s32 5, %v2640_v15 }
 0x3f9   : > { %v2751_v28 = vsub.f32 %v641_v55, %v683_v24  ;;  %v711_v61 = vsel %vm254_vm0, %v697_v26, 0.0  ;;  %2056 = vmatpush3.bf16.msra.mxu1 %v2053_v48  ;;  %v241_v55 = vld [vmem:[#allocation5 + $0x68] sm:$0xff] }
 0x3fa   : > { %v2754_v29 = vsub.f32 %v636_v57, %v682_v60  ;;  %712 = vadd.xlane.f32.xlu1 %v711_v61  ;;  %v677_v30 = vpop.xlane.xlu1 %676  ;;  %v708_v31 = vsel %vm254_vm0, %v696_v27, 0.0  ;;  %2058 = vmatprep.subr.bf16.mxu1 %v2057_v53  ;;  %v2048_v56 = vpack.c.bf16 %v241_v55, %v240_v54  ;;  %v2400_v57 = vmov 0.0|0.0  }
 0x3fb   : > { %v685_v32 = vmul.f32 0.03125, %v677_v30  ;;  %709 = vadd.xlane.f32.xlu0 %v708_v31  ;;  %v674_v33 = vpop.xlane.xlu0 %673  ;;  %v699_v6 = vmul.f32 %v2751_v28, %v2751_v28  ;;  %2047 = vmatprep.subr.bf16.mxu0 %v2400_v57  ;;  %v2778_v30 = vrot.slane %v2645_v17, %v760_v23 }
 0x3fc   : > { %v684_v34 = vmul.f32 0.03125, %v674_v33  ;;  %v698_v35 = vmul.f32 %v2754_v29, %v2754_v29  ;;  %2049 = vmatpush3.bf16.msra.mxu0 %v2048_v56 }
 0x3fd   : > { %v2761_v7 = vsub.f32 %v651_v63, %v685_v32  ;;  %v717_v14 = vsel %vm254_vm0, %v699_v6, 0.0  ;;  %2060 = vmatpush3.bf16.msra.mxu1 %v2057_v53  ;;  %2050 = vmatprep.subr.bf16.mxu0 %v2400_v57  ;;  %v2402_v63 = vmov 0.0  }
 0x3fe   : > { %v2764_v37 = vsub.f32 %v646_v1, %v684_v34  ;;  %718 = vadd.xlane.f32.xlu1 %v717_v14  ;;  %v714_v38 = vsel %vm254_vm0, %v698_v35, 0.0  ;;  %1988 = vmatprep.mubr.msk.f32.mxu0 %vm2401_vm1, %v2402_v63  ;;  %v2783_v34 = vrot.slane %v2645_v17, %v772_v25 }
 0x3ff   : > { %715 = vadd.xlane.f32.xlu0 %v714_v38  ;;  %v701_v39 = vmul.f32 %v2761_v7, %v2761_v7 }
 0x400   : > { %v700_v40 = vmul.f32 %v2764_v37, %v2764_v37  ;;  %2052 = vmatpush3.bf16.msra.mxu0 %v2051_v62 }
 0x401   : > { %v723_v42 = vsel %vm254_vm0, %v701_v39, 0.0 }
 0x402   : > { %724 = vadd.xlane.f32.xlu1 %v723_v42  ;;  %v720_v43 = vsel %vm254_vm0, %v700_v40, 0.0 }
 0x403   : > { %721 = vadd.xlane.f32.xlu0 %v720_v43 }
 0x483   : > { %v707_v0 = vpop.xlane.xlu1 %706 }
 0x484   : > { %v727_v1 = vmul.f32 0.03125, %v707_v0  ;;  %v704_v2 = vpop.xlane.xlu0 %703 }
 0x485   : > { %v726_v3 = vmul.f32 0.03125, %v704_v2 }
 0x486   : > { %v735_v4 = vadd.f32 1e-05, %v727_v1 }
 0x487   : > { %v734_v5 = vadd.f32 1e-05, %v726_v3  ;;  %v713_v8 = vpop.xlane.xlu1 %712 }
 0x488   : > { %2164 = vrsqrt.f32 %v735_v4  ;;  %v729_v45 = vmul.f32 0.03125, %v713_v8  ;;  %v710_v11 = vpop.xlane.xlu0 %709 }
 0x489   : > { %2166 = vrsqrt.f32 %v734_v5  ;;  %v728_v12 = vmul.f32 0.03125, %v710_v11 }
 0x48a   : > { %v737_v13 = vadd.f32 1e-05, %v729_v45 }
 0x48b   : > { %v736_v18 = vadd.f32 1e-05, %v728_v12  ;;  %v719_v19 = vpop.xlane.xlu1 %718 }
 0x48c   : > { %2168 = vrsqrt.f32 %v737_v13  ;;  %v731_v20 = vmul.f32 0.03125, %v719_v19  ;;  %v716_v52 = vpop.xlane.xlu0 %715 }
 0x48d   : > { %2170 = vrsqrt.f32 %v736_v18  ;;  %v730_v51 = vmul.f32 0.03125, %v716_v52 }
 0x48e   : > { %v739_v24 = vadd.f32 1e-05, %v731_v20 }
 0x48f   : > { %v738_v26 = vadd.f32 1e-05, %v730_v51  ;;  %v725_v60 = vpop.xlane.xlu1 %724 }
 0x490   : > { %2172 = vrsqrt.f32 %v739_v24  ;;  %v733_v27 = vmul.f32 0.03125, %v725_v60  ;;  %v722_v61 = vpop.xlane.xlu0 %721 }
 0x491   : > { %2174 = vrsqrt.f32 %v738_v26  ;;  %v732_v31 = vmul.f32 0.03125, %v722_v61 }
 0x492   : > { %v2165_v32 = vpop.eup %2164  ;;  %v741_v33 = vadd.f32 1e-05, %v733_v27 }
 0x493   : > { %v2167_v6 = vpop.eup %2166  ;;  %v751_v35 = vmul.f32 %v2165_v32, %v2733_v9  ;;  %v740_v14 = vadd.f32 1e-05, %v732_v31 }
 0x494   : > { %2176 = vrsqrt.f32 %v741_v33  ;;  %v750_v38 = vmul.f32 %v2167_v6, %v2735_v10 }
 0x495   : > { %v763_v39 = vmul.f32 %v2778_v30, %v751_v35  ;;  %2178 = vrsqrt.f32 %v740_v14 }
 0x496   : > { %v2169_v40 = vpop.eup %2168  ;;  %v762_v42 = vmul.f32 %v2778_v30, %v750_v38 }
 0x497   : > { %v2171_v43 = vpop.eup %2170  ;;  %v775_v44 = vadd.f32 %v2783_v34, %v763_v39  ;;  %v753_v46 = vmul.f32 %v2169_v40, %v2741_v21 }
 0x498   : > { %v774_v48 = vadd.f32 %v2783_v34, %v762_v42  ;;  %v752_v49 = vmul.f32 %v2171_v43, %v2744_v22 }
 0x499   : > { %v783_v9 = vmax.f32 %v775_v44, 0.0  ;;  %v765_v50 = vmul.f32 %v2778_v30, %v753_v46 }
 0x49a   : > { %v2173_v53 = vpop.eup %2172  ;;  %v782_v10 = vmax.f32 %v774_v48, 0.0  ;;  %v764_v54 = vmul.f32 %v2778_v30, %v752_v49 }
 0x49b   : > { %v2175_v55 = vpop.eup %2174  ;;  %v797_v56 = vsel %vm254_vm0, %v783_v9, -inf  ;;  %v777_v57 = vadd.f32 %v2783_v34, %v765_v50  ;;  %v755_v58 = vmul.f32 %v2173_v53, %v2751_v28 }
 0x49c   : > { %v798_v59 = vrot.slane %v797_v56, 4  ;;  %v790_v21 = vsel %vm254_vm0, %v782_v10, -inf  ;;  %1999 = vmatprep.mubr.msk.f32.mxu1 %vm254_vm0, %v782_v10  ;;  %v776_v22 = vadd.f32 %v2783_v34, %v764_v54  ;;  %v754_v62 = vmul.f32 %v2175_v55, %v2754_v29 }
 0x49d   : > { %v791_v63 = vrot.slane %v790_v21, 4  ;;  %2000 = vmatmul.mubr.msk.f32.vlgmr.msra.gmra.mrb[8].mxu1 %vm254_vm0, %v783_v9  ;;  %v785_v0 = vmax.f32 %v777_v57, 0.0  ;;  %v767_v1 = vmul.f32 %v2778_v30, %v755_v58 }
 0x49e   : > { %v2177_v2 = vpop.eup %2176  ;;  %v799_v3 = vmax.f32 %v797_v56, %v798_v59  ;;  %v784_v4 = vmax.f32 %v776_v22, 0.0  ;;  %v766_v28 = vmul.f32 %v2778_v30, %v754_v62 }
 0x49f   : > { %v2179_v5 = vpop.eup %2178  ;;  %v792_v8 = vmax.f32 %v790_v21, %v791_v63  ;;  %v811_v45 = vsel %vm254_vm0, %v785_v0, -inf  ;;  %v779_v11 = vadd.f32 %v2783_v34, %v767_v1  ;;  %v757_v12 = vmul.f32 %v2177_v2, %v2761_v7 }
 0x4a0   : > { %v800_v29 = vrot.slane %v799_v3, 2  ;;  %v804_v13 = vsel %vm254_vm0, %v784_v4, -inf  ;;  %2002 = vmatprep.mubr.msk.f32.mxu1 %vm254_vm0, %v784_v4  ;;  %v812_v18 = vrot.slane %v811_v45, 4  ;;  %v778_v19 = vadd.f32 %v2783_v34, %v766_v28 }
 0x4a1   : > { %v793_v20 = vrot.slane %v792_v8, 2  ;;  %v805_v52 = vrot.slane %v804_v13, 4  ;;  %2003 = vmatmul.mubr.msk.f32.gmra.mrb[10].mxu1 %vm254_vm0, %v785_v0  ;;  %v787_v51 = vmax.f32 %v779_v11, 0.0  ;;  %v756_v24 = vmul.f32 %v2179_v5, %v2764_v37 }
 0x4a2   : > { %v801_v26 = vmax.f32 %v799_v3, %v800_v29  ;;  %v813_v60 = vmax.f32 %v811_v45, %v812_v18  ;;  %v786_v27 = vmax.f32 %v778_v19, 0.0  ;;  %v769_v7 = vmul.f32 %v2778_v30, %v757_v12 }
 0x4a3   : > { %v794_v61 = vmax.f32 %v792_v8, %v793_v20  ;;  %v806_v31 = vmax.f32 %v804_v13, %v805_v52  ;;  %v825_v32 = vsel %vm254_vm0, %v787_v51, -inf  ;;  %v768_v33 = vmul.f32 %v2778_v30, %v756_v24 }
 0x4a4   : > { %v802_v6 = vrot.slane %v801_v26, 1  ;;  %v814_v35 = vrot.slane %v813_v60, 2  ;;  %v818_v14 = vsel %vm254_vm0, %v786_v27, -inf  ;;  %2005 = vmatprep.mubr.msk.f32.mxu1 %vm254_vm0, %v786_v27  ;;  %v826_v38 = vrot.slane %v825_v32, 4 }
 0x4a5   : > { %v795_v39 = vrot.slane %v794_v61, 1  ;;  %v807_v37 = vrot.slane %v806_v31, 2  ;;  %v819_v40 = vrot.slane %v818_v14, 4  ;;  %2006 = vmatmul.mubr.msk.f32.gmra.mrb[12].mxu1 %vm254_vm0, %v787_v51  ;;  %v780_v42 = vadd.f32 %v2783_v34, %v768_v33 }
 0x4a6   : > { %v815_v43 = vmax.f32 %v813_v60, %v814_v35  ;;  %v827_v44 = vmax.f32 %v825_v32, %v826_v38  ;;  %v781_v46 = vadd.f32 %v2783_v34, %v769_v7  ;;  %v803_v9 = vmax.f32 %v801_v26, %v802_v6 }
 0x4a7   : > { %v808_v48 = vmax.f32 %v806_v31, %v807_v37  ;;  %v820_v30 = vmax.f32 %v818_v14, %v819_v40  ;;  %v788_v49 = vmax.f32 %v780_v42, 0.0  ;;  %v796_v10 = vmax.f32 %v794_v61, %v795_v39 }
 0x4a8   : > { %v828_v50 = vrot.slane %v827_v44, 2  ;;  %v789_v53 = vmax.f32 %v781_v46, 0.0  ;;  %v816_v57 = vrot.slane %v815_v43, 1  ;;  %v2403_v14 = vmov 1966171168  }
 0x4a9   : > { %v809_v54 = vrot.slane %v808_v48, 1  ;;  %v821_v55 = vrot.slane %v820_v30, 2  ;;  %v832_v56 = vsel %vm254_vm0, %v788_v49, -inf  ;;  %2008 = vmatprep.mubr.msk.f32.mxu1 %vm254_vm0, %v788_v49  ;;  %v855_v0 = vsel %vm854_vm2, %v803_v9, %v796_v10 }
 0x4aa   : > { %v833_v58 = vrot.slane %v832_v56, 4  ;;  %v839_v59 = vsel %vm254_vm0, %v789_v53, -inf  ;;  %2009 = vmatmul.mubr.msk.f32.gmra.mrb[14].mxu1 %vm254_vm0, %v789_v53  ;;  %v829_v22 = vmax.f32 %v827_v44, %v828_v50  ;;  %v817_v28 = vmax.f32 %v815_v43, %v816_v57 }
 0x4ab   : > { %v810_v34 = vmax.f32 %v808_v48, %v809_v54  ;;  %v822_v21 = vmax.f32 %v820_v30, %v821_v55  ;;  %v840_v62 = vrot.slane %v839_v59, 4  ;;  %v1072_v38 = vunpack.c.l.s4 %v2403_v14 }
 0x4ac   : > { %v834_v63 = vmax.f32 %v832_v56, %v833_v58  ;;  %v830_v8 = vrot.slane %v829_v22, 1  ;;  %v1169_v46 = vsub.s32 6, %v2640_v15 }
 0x4ad   : > { %v823_v1 = vrot.slane %v822_v21, 1  ;;  %v841_v2 = vmax.f32 %v839_v59, %v840_v62  ;;  %v857_v3 = vsel %vm856_vm3, %v810_v34, %v855_v0  ;;  %v1073_v39 = vunpack.c.0.s8 %v1072_v38 }
 0x4ae   : > { %v835_v4 = vrot.slane %v834_v63, 2  ;;  %v859_v29 = vsel %vm858_vm4, %v817_v28, %v857_v3  ;;  %v831_v19 = vmax.f32 %v829_v22, %v830_v8  ;;  %v1170_v55 = vrot.slane %v2645_v17, %v1169_v46 }
 0x4af   : > { %v824_v5 = vmax.f32 %v822_v21, %v823_v1  ;;  %v842_v45 = vrot.slane %v841_v2, 2  ;;  %v1076_v37 = vsub.s32 %v1073_v39, %v2640_v15 }
 0x4b0   : > { %v836_v11 = vmax.f32 %v834_v63, %v835_v4 }
 0x4b1   : > { %v843_v12 = vmax.f32 %v841_v2, %v842_v45  ;;  %v861_v18 = vsel %vm860_vm5, %v824_v5, %v859_v29 }
 0x4b2   : > { %v837_v13 = vrot.slane %v836_v11, 1  ;;  %v863_v24 = vsel %vm862_vm6, %v831_v19, %v861_v18 }
 0x4b3   : > { %v844_v20 = vrot.slane %v843_v12, 1 }
 0x4b4   : > { %v838_v52 = vmax.f32 %v836_v11, %v837_v13 }
 0x4b5   : > { %v845_v51 = vmax.f32 %v843_v12, %v844_v20 }
 0x4b6   : > { %v865_v26 = vsel %vm864_vm7, %v838_v52, %v863_v24 }
 0x4b7   : > { %v867_v60 = vsel %vm866_vm8, %v845_v51, %v865_v26 }
 0x4b8   : > { %1989 = vmatmul.mubr.msk.f32.vlgmr.msra.gmra.mrb[8].mxu0 %vm254_vm0, %v867_v60 }
 0x570   : > { %v2001_v27 = vpop.f32.mrb[8].mxu1 }
 0x571   : > { %v1030_v7 = vpop.f32.mrb[9].mxu1 }
 0x574   : > { %v2004_v61 = vpop.f32.mrb[10].mxu1 }
 0x575   : > { %v1040_v31 = vpop.f32.mrb[11].mxu1 }
 0x578   : > { %v2007_v32 = vpop.f32.mrb[12].mxu1 }
 0x579   : > { %v1050_v33 = vpop.f32.mrb[13].mxu1 }
 0x57d   : > { %v2010_v6 = vpop.f32.mrb[14].mxu1 }
 0x57e   : > { %v1060_v35 = vpop.f32.mrb[15].mxu1 }
 0x58b   : > { %v936_v40 = vpop.f32.mrb[8].mxu0 }
 0x58c   : > { %v1070_v42 = vcombine.high %v936_v40, %v936_v40  ;;  %v1077_v43 = vrot.slane %v936_v40, %v1076_v37  ;;  %v1990_v44 = vpop.f32.mrb[9].mxu0 }
 0x58e   : > { %v1084_v48 = vrot.slane %v1070_v42, %v1076_v37  ;;  %v1085_v30 = vcombine.high %v1077_v43, %v1077_v43  ;;  %v1093_v49 = vrot.slane %v1077_v43, %v1076_v37 }
 0x590   : > { %v1086_v9 = vcombine.high %v1084_v48, %v1084_v48  ;;  %v1100_v50 = vrot.slane %v1084_v48, %v1076_v37  ;;  %v1107_v53 = vrot.slane %v1085_v30, %v1076_v37  ;;  %v1115_v10 = vcombine.high %v1093_v49, %v1093_v49 }
 0x591   : > { %v1122_v54 = vrot.slane %v1093_v49, %v2643_v16 }
 0x592   : > { %v1114_v56 = vrot.slane %v1086_v9, %v1076_v37  ;;  %v1116_v57 = vcombine.high %v1100_v50, %v1100_v50  ;;  %v1117_v58 = vcombine.high %v1107_v53, %v1107_v53  ;;  %v1126_v59 = vrot.slane %v1107_v53, %v2643_v16 }
 0x593   : > { %v1159_v34 = vadd.f32 %v1122_v54, %v1030_v7  ;;  %v1130_v21 = vrot.slane %v1115_v10, %v2643_v16  ;;  %v1138_v22 = vrot.slane %v1100_v50, %v2643_v16 }
 0x594   : > { %v1160_v62 = vadd.f32 %v2001_v27, %v1126_v59  ;;  %v1134_v63 = vrot.slane %v1117_v58, %v2643_v16  ;;  %v1146_v0 = vrot.slane %v1116_v57, %v2643_v16  ;;  %v1142_v1 = vrot.slane %v1114_v56, %v2643_v16 }
 0x595   : > { %v1171_v2 = vadd.f32 %v1170_v55, %v1159_v34  ;;  %v1161_v3 = vadd.f32 %v1130_v21, %v1040_v31  ;;  %v1163_v17 = vadd.f32 %v1138_v22, %v1050_v33  ;;  %v1118_v4 = vcombine.high %v1114_v56, %v1114_v56 }
 0x596   : > { %v1172_v28 = vadd.f32 %v1170_v55, %v1160_v62  ;;  %v1162_v5 = vadd.f32 %v2004_v61, %v1134_v63  ;;  %v1165_v8 = vadd.f32 %v1146_v0, %v1060_v35  ;;  %v1164_v45 = vadd.f32 %v2007_v32, %v1142_v1 }
 0x597   : > { %v1179_v11 = vsel %vm254_vm0, %v1171_v2, 0.0  ;;  %v1173_v12 = vadd.f32 %v1170_v55, %v1161_v3  ;;  %v1150_v29 = vrot.slane %v1118_v4, %v2643_v16  ;;  %v1175_v52 = vadd.f32 %v1170_v55, %v1163_v17 }
 0x598   : > { %1180 = vadd.xlane.f32.xlu0 %v1179_v11  ;;  %v1182_v13 = vsel %vm254_vm0, %v1172_v28, 0.0  ;;  %v1174_v18 = vadd.f32 %v1170_v55, %v1162_v5  ;;  %v1177_v24 = vadd.f32 %v1170_v55, %v1165_v8  ;;  %v1176_v60 = vadd.f32 %v1170_v55, %v1164_v45  ;;  %v244_v45 = vld [vmem:[#allocation5 + $0x80] sm:$0xff]  ;;  %v245_v11 = vld [vmem:[#allocation5 + $0x88] sm:$0xff] }
 0x599   : > { %1183 = vadd.xlane.f32.xlu1 %v1182_v13  ;;  %v1166_v19 = vadd.f32 %v2010_v6, %v1150_v29  ;;  %v1185_v20 = vsel %vm254_vm0, %v1173_v12, 0.0  ;;  %v1191_v26 = vsel %vm254_vm0, %v1175_v52, 0.0  ;;  %v246_v29 = vld [vmem:[#allocation5 + $0x90] sm:$0xff]  ;;  %v247_v13 = vld [vmem:[#allocation5 + $0x98] sm:$0xff] }
 0x59a   : > { %v1188_v51 = vsel %vm254_vm0, %v1174_v18, 0.0  ;;  %v1197_v27 = vsel %vm254_vm0, %v1177_v24, 0.0  ;;  %v1194_v61 = vsel %vm254_vm0, %v1176_v60, 0.0 }
 0x59b   : > { %v1178_v7 = vadd.f32 %v1170_v55, %v1166_v19 }
 0x59c   : > { %1186 = vadd.xlane.f32.xlu0 %v1185_v20 }
 0x59d   : > { %1189 = vadd.xlane.f32.xlu1 %v1188_v51  ;;  %v1200_v31 = vsel %vm254_vm0, %v1178_v7, 0.0 }
 0x5a0   : > { %1192 = vadd.xlane.f32.xlu0 %v1191_v26 }
 0x5a1   : > { %1198 = vadd.xlane.f32.xlu1 %v1197_v27 }
 0x5a4   : > { %1195 = vadd.xlane.f32.xlu0 %v1194_v61 }
 0x5a5   : > { %1201 = vadd.xlane.f32.xlu1 %v1200_v31 }
 0x625   : > { %v1181_v32 = vpop.xlane.xlu0 %1180 }
 0x626   : > { %v1203_v33 = vmul.f32 0.03125, %v1181_v32  ;;  %v1184_v6 = vpop.xlane.xlu1 %1183 }
 0x627   : > { %v1204_v35 = vmul.f32 0.03125, %v1184_v6 }
 0x628   : > { %v2846_v14 = vsub.f32 %v1171_v2, %v1203_v33 }
 0x629   : > { %v2848_v38 = vsub.f32 %v1172_v28, %v1204_v35  ;;  %v1187_v39 = vpop.xlane.xlu0 %1186 }
 0x62a   : > { %v1205_v37 = vmul.f32 0.03125, %v1187_v39  ;;  %v1190_v40 = vpop.xlane.xlu1 %1189  ;;  %v1219_v42 = vmul.f32 %v2846_v14, %v2846_v14 }
 0x62b   : > { %v1206_v43 = vmul.f32 0.03125, %v1190_v40  ;;  %v1220_v44 = vmul.f32 %v2848_v38, %v2848_v38 }
 0x62c   : > { %v2854_v46 = vsub.f32 %v1173_v12, %v1205_v37  ;;  %v1227_v48 = vsel %vm254_vm0, %v1219_v42, 0.0  ;;  %v2061_v12 = vpack.c.bf16 %v245_v11, %v244_v45  ;;  %v1285_v37 = vsub.s32 7, %v2640_v15 }
 0x62d   : > { %v2857_v30 = vsub.f32 %v1174_v18, %v1206_v43  ;;  %v1193_v49 = vpop.xlane.xlu0 %1192  ;;  %1228 = vadd.xlane.f32.xlu0 %v1227_v48  ;;  %v1230_v9 = vsel %vm254_vm0, %v1220_v44, 0.0  ;;  %v2065_v18 = vpack.c.bf16 %v247_v13, %v246_v29  ;;  %v2887_v44 = vld [vmem:[#allocation7 + $0x8] sm:$0xff] }
 0x62e   : > { %v1207_v50 = vmul.f32 0.03125, %v1193_v49  ;;  %v1199_v53 = vpop.xlane.xlu1 %1198  ;;  %1231 = vadd.xlane.f32.xlu1 %v1230_v9  ;;  %v1221_v10 = vmul.f32 %v2854_v46, %v2854_v46  ;;  %2062 = vmatprep.subr.bf16.mxu0 %v2061_v12  ;;  %v2228_v9 = vld [vmem:[#allocation7] sm:$0xff] }
 0x62f   : > { %v1209_v54 = vmul.f32 0.03125, %v1199_v53  ;;  %v1222_v55 = vmul.f32 %v2857_v30, %v2857_v30  ;;  %2069 = vmatprep.subr.bf16.mxu1 %v2061_v12  ;;  %2064 = vmatpush3.bf16.msra.mxu0 %v2061_v12 }
 0x630   : > { %v2864_v56 = vsub.f32 %v1175_v52, %v1207_v50  ;;  %v1233_v57 = vsel %vm254_vm0, %v1221_v10, 0.0  ;;  %2071 = vmatpush3.bf16.msra.mxu1 %v2061_v12  ;;  %2066 = vmatprep.subr.bf16.mxu0 %v2065_v18  ;;  %v1286_v50 = vrot.slane %v2228_v9, %v1285_v37 }
 0x631   : > { %v2867_v58 = vsub.f32 %v1177_v24, %v1209_v54  ;;  %1234 = vadd.xlane.f32.xlu0 %v1233_v57  ;;  %v1196_v59 = vpop.xlane.xlu0 %1195  ;;  %v1236_v34 = vsel %vm254_vm0, %v1222_v55, 0.0  ;;  %2070 = vmatprep.subr.bf16.mxu1 %v2065_v18  ;;  %v1298_v57 = vrot.slane %v2887_v44, %v2643_v16 }
 0x632   : > { %v1208_v21 = vmul.f32 0.03125, %v1196_v59  ;;  %1237 = vadd.xlane.f32.xlu1 %v1236_v34  ;;  %v1202_v22 = vpop.xlane.xlu1 %1201  ;;  %v1223_v62 = vmul.f32 %v2864_v56, %v2864_v56 }
 0x633   : > { %v1210_v63 = vmul.f32 0.03125, %v1202_v22  ;;  %v1225_v0 = vmul.f32 %v2867_v58, %v2867_v58  ;;  %2068 = vmatpush3.bf16.msra.mxu0 %v2065_v18 }
 0x634   : > { %v2874_v1 = vsub.f32 %v1176_v60, %v1208_v21  ;;  %v1239_v2 = vsel %vm254_vm0, %v1223_v62, 0.0  ;;  %2072 = vmatpush3.bf16.msra.mxu1 %v2065_v18 }
 0x635   : > { %v2877_v3 = vsub.f32 %v1178_v7, %v1210_v63  ;;  %1240 = vadd.xlane.f32.xlu0 %v1239_v2  ;;  %v1245_v17 = vsel %vm254_vm0, %v1225_v0, 0.0 }
 0x636   : > { %1246 = vadd.xlane.f32.xlu1 %v1245_v17  ;;  %v1224_v4 = vmul.f32 %v2874_v1, %v2874_v1 }
 0x637   : > { %v1226_v28 = vmul.f32 %v2877_v3, %v2877_v3 }
 0x638   : > { %v1242_v5 = vsel %vm254_vm0, %v1224_v4, 0.0 }
 0x639   : > { %1243 = vadd.xlane.f32.xlu0 %v1242_v5  ;;  %v1248_v8 = vsel %vm254_vm0, %v1226_v28, 0.0 }
 0x63a   : > { %1249 = vadd.xlane.f32.xlu1 %v1248_v8 }
 0x6ba   : > { %v1229_v19 = vpop.xlane.xlu0 %1228 }
 0x6bb   : > { %v1251_v20 = vmul.f32 0.03125, %v1229_v19  ;;  %v1232_v52 = vpop.xlane.xlu1 %1231 }
 0x6bc   : > { %v1252_v51 = vmul.f32 0.03125, %v1232_v52 }
 0x6bd   : > { %v1259_v24 = vadd.f32 1e-05, %v1251_v20 }
 0x6be   : > { %v1260_v26 = vadd.f32 1e-05, %v1252_v51  ;;  %v1235_v60 = vpop.xlane.xlu0 %1234 }
 0x6bf   : > { %2180 = vrsqrt.f32 %v1259_v24  ;;  %v1253_v27 = vmul.f32 0.03125, %v1235_v60  ;;  %v1238_v7 = vpop.xlane.xlu1 %1237 }
 0x6c0   : > { %2182 = vrsqrt.f32 %v1260_v26  ;;  %v1254_v61 = vmul.f32 0.03125, %v1238_v7 }
 0x6c1   : > { %v1261_v31 = vadd.f32 1e-05, %v1253_v27 }
 0x6c2   : > { %v1262_v32 = vadd.f32 1e-05, %v1254_v61  ;;  %v1241_v33 = vpop.xlane.xlu0 %1240 }
 0x6c3   : > { %2184 = vrsqrt.f32 %v1261_v31  ;;  %v1255_v6 = vmul.f32 0.03125, %v1241_v33  ;;  %v1247_v35 = vpop.xlane.xlu1 %1246 }
 0x6c4   : > { %2186 = vrsqrt.f32 %v1262_v32  ;;  %v1257_v39 = vmul.f32 0.03125, %v1247_v35 }
 0x6c5   : > { %v1263_v40 = vadd.f32 1e-05, %v1255_v6 }
 0x6c6   : > { %v1265_v42 = vadd.f32 1e-05, %v1257_v39  ;;  %v1244_v43 = vpop.xlane.xlu0 %1243 }
 0x6c7   : > { %2188 = vrsqrt.f32 %v1263_v40  ;;  %v1256_v48 = vmul.f32 0.03125, %v1244_v43  ;;  %v1250_v49 = vpop.xlane.xlu1 %1249 }
 0x6c8   : > { %2190 = vrsqrt.f32 %v1265_v42  ;;  %v1258_v53 = vmul.f32 0.03125, %v1250_v49 }
 0x6c9   : > { %v2181_v10 = vpop.eup %2180  ;;  %v1264_v54 = vadd.f32 1e-05, %v1256_v48 }
 0x6ca   : > { %v2183_v55 = vpop.eup %2182  ;;  %v1266_v59 = vadd.f32 1e-05, %v1258_v53  ;;  %v1275_v34 = vmul.f32 %v2181_v10, %v2846_v14 }
 0x6cb   : > { %v1276_v21 = vmul.f32 %v2183_v55, %v2848_v38  ;;  %2192 = vrsqrt.f32 %v1264_v54 }
 0x6cc   : > { %2194 = vrsqrt.f32 %v1266_v59  ;;  %v1287_v22 = vmul.f32 %v1286_v50, %v1275_v34 }
 0x6cd   : > { %v2185_v62 = vpop.eup %2184  ;;  %v1288_v63 = vmul.f32 %v1286_v50, %v1276_v21 }
 0x6ce   : > { %v2187_v0 = vpop.eup %2186  ;;  %v1299_v2 = vadd.f32 %v1298_v57, %v1287_v22  ;;  %v1277_v17 = vmul.f32 %v2185_v62, %v2854_v46 }
 0x6cf   : > { %v1300_v4 = vadd.f32 %v1298_v57, %v1288_v63  ;;  %v1278_v28 = vmul.f32 %v2187_v0, %v2857_v30 }
 0x6d0   : > { %v1307_v5 = vmax.f32 %v1299_v2, 0.0  ;;  %v1289_v8 = vmul.f32 %v1286_v50, %v1277_v17 }
 0x6d1   : > { %v2189_v16 = vpop.eup %2188  ;;  %v1308_v45 = vmax.f32 %v1300_v4, 0.0  ;;  %v1290_v11 = vmul.f32 %v1286_v50, %v1278_v28 }
 0x6d2   : > { %v2191_v14 = vpop.eup %2190  ;;  %2019 = vmatprep.mubr.msk.f32.mxu0 %vm254_vm0, %v1307_v5  ;;  %v1301_v38 = vadd.f32 %v1298_v57, %v1289_v8  ;;  %v1279_v12 = vmul.f32 %v2189_v16, %v2864_v56 }
 0x6d3   : > { %2020 = vmatmul.mubr.msk.f32.vlgmr.msra.gmra.mrb[10].mxu0 %vm254_vm0, %v1308_v45  ;;  %v1302_v29 = vadd.f32 %v1298_v57, %v1290_v11  ;;  %v1281_v13 = vmul.f32 %v2191_v14, %v2867_v58 }
 0x6d4   : > { %v1309_v46 = vmax.f32 %v1301_v38, 0.0  ;;  %v1291_v18 = vmul.f32 %v1286_v50, %v1279_v12 }
 0x6d5   : > { %v2193_v19 = vpop.eup %2192  ;;  %v1310_v30 = vmax.f32 %v1302_v29, 0.0  ;;  %v1293_v20 = vmul.f32 %v1286_v50, %v1281_v13 }
 0x6d6   : > { %v2195_v52 = vpop.eup %2194  ;;  %2022 = vmatprep.mubr.msk.f32.mxu0 %vm254_vm0, %v1309_v46  ;;  %v1303_v51 = vadd.f32 %v1298_v57, %v1291_v18  ;;  %v1280_v24 = vmul.f32 %v2193_v19, %v2874_v1  ;;  %v1318_v1 = vrot.slane %v2887_v44, %v491_v41 }
 0x6d7   : > { %v1282_v26 = vmul.f32 %v2195_v52, %v2877_v3  ;;  %2023 = vmatmul.mubr.msk.f32.gmra.mrb[12].mxu0 %vm254_vm0, %v1310_v30  ;;  %v1305_v56 = vadd.f32 %v1298_v57, %v1293_v20 }
 0x6d8   : > { %v1311_v60 = vmax.f32 %v1303_v51, 0.0  ;;  %v1292_v27 = vmul.f32 %v1286_v50, %v1280_v24 }
 0x6d9   : > { %v1294_v7 = vmul.f32 %v1286_v50, %v1282_v26  ;;  %v1313_v58 = vmax.f32 %v1305_v56, 0.0 }
 0x6da   : > { %2025 = vmatprep.mubr.msk.f32.mxu0 %vm254_vm0, %v1311_v60  ;;  %v1304_v61 = vadd.f32 %v1298_v57, %v1292_v27 }
 0x6db   : > { %v1306_v31 = vadd.f32 %v1298_v57, %v1294_v7  ;;  %2028 = vmatprep.mubr.msk.f32.mxu1 %vm254_vm0, %v1313_v58 }
 0x6dc   : > { %v1312_v32 = vmax.f32 %v1304_v61, 0.0 }
 0x6dd   : > { %v1314_v33 = vmax.f32 %v1306_v31, 0.0 }
 0x6de   : > { %2026 = vmatmul.mubr.msk.f32.gmra.mrb[14].mxu0 %vm254_vm0, %v1312_v32 }
 0x6df   : > { %2029 = vmatmul.mubr.msk.f32.vlgmr.msra.gmra.mrb[16].mxu1 %vm254_vm0, %v1314_v33 }
 0x7a6   : > { %v2021_v3 = vpop.f32.mrb[10].mxu0 }
 0x7a7   : > { %v1415_v6 = vadd.f32 %v2021_v3, %v1318_v1  ;;  %v1409_v35 = vpop.f32.mrb[11].mxu0 }
 0x7a8   : > { %v1410_v39 = vadd.f32 %v1409_v35, %v1318_v1 }
 0x7a9   : > { %v1451_v37 = vsel %vm254_vm0, %v1415_v6, 0.0 }
 0x7aa   : > { %1452 = vadd.xlane.f32.xlu1 %v1451_v37  ;;  %v2024_v40 = vpop.f32.mrb[12].mxu0  ;;  %v1448_v42 = vsel %vm254_vm0, %v1410_v39, 0.0 }
 0x7ab   : > { %v1425_v43 = vadd.f32 %v2024_v40, %v1318_v1  ;;  %v1419_v48 = vpop.f32.mrb[13].mxu0  ;;  %1449 = vadd.xlane.f32.xlu0 %v1448_v42 }
 0x7ac   : > { %v1420_v49 = vadd.f32 %v1419_v48, %v1318_v1 }
 0x7ad   : > { %v1457_v9 = vsel %vm254_vm0, %v1425_v43, 0.0 }
 0x7ae   : > { %1458 = vadd.xlane.f32.xlu1 %v1457_v9  ;;  %v1454_v50 = vsel %vm254_vm0, %v1420_v49, 0.0 }
 0x7af   : > { %1455 = vadd.xlane.f32.xlu0 %v1454_v50 }
 0x7b1   : > { %v2027_v41 = vpop.f32.mrb[14].mxu0 }
 0x7b2   : > { %v1435_v53 = vadd.f32 %v2027_v41, %v1318_v1  ;;  %v1429_v10 = vpop.f32.mrb[15].mxu0  ;;  %v2030_v54 = vpop.f32.mrb[16].mxu1 }
 0x7b3   : > { %v1430_v55 = vadd.f32 %v1429_v10, %v1318_v1  ;;  %v1439_v57 = vpop.f32.mrb[17].mxu1  ;;  %v1445_v59 = vadd.f32 %v2030_v54, %v1318_v1 }
 0x7b4   : > { %v1463_v34 = vsel %vm254_vm0, %v1435_v53, 0.0  ;;  %v1440_v21 = vadd.f32 %v1439_v57, %v1318_v1 }
 0x7b5   : > { %1464 = vadd.xlane.f32.xlu1 %v1463_v34  ;;  %v1460_v22 = vsel %vm254_vm0, %v1430_v55, 0.0  ;;  %v1469_v62 = vsel %vm254_vm0, %v1445_v59, 0.0 }
 0x7b6   : > { %1461 = vadd.xlane.f32.xlu0 %v1460_v22  ;;  %v1466_v63 = vsel %vm254_vm0, %v1440_v21, 0.0 }
 0x7b9   : > { %1470 = vadd.xlane.f32.xlu1 %v1469_v62  ;;  %v2961_v62 = vrot.slane %v2887_v44, %v503_v47 }
 0x7ba   : > { %1467 = vadd.xlane.f32.xlu0 %v1466_v63 }
 0x837   : > { %v1453_v0 = vpop.xlane.xlu1 %1452 }
 0x838   : > { %v1473_v2 = vmul.f32 0.03125, %v1453_v0  ;;  %v1450_v17 = vpop.xlane.xlu0 %1449 }
 0x839   : > { %v1472_v4 = vmul.f32 0.03125, %v1450_v17 }
 0x83a   : > { %v2918_v28 = vsub.f32 %v1415_v6, %v1473_v2 }
 0x83b   : > { %v2920_v5 = vsub.f32 %v1410_v39, %v1472_v4  ;;  %v1459_v8 = vpop.xlane.xlu1 %1458 }
 0x83c   : > { %v1475_v16 = vmul.f32 0.03125, %v1459_v8  ;;  %v1456_v45 = vpop.xlane.xlu0 %1455  ;;  %v1489_v11 = vmul.f32 %v2918_v28, %v2918_v28  ;;  %v2966_v8 = vrot.slane %v2887_v44, %v523_v36 }
 0x83d   : > { %v1474_v14 = vmul.f32 0.03125, %v1456_v45  ;;  %v1488_v38 = vmul.f32 %v2920_v5, %v2920_v5 }
 0x83e   : > { %v2926_v12 = vsub.f32 %v1425_v43, %v1475_v16  ;;  %v1499_v29 = vsel %vm254_vm0, %v1489_v11, 0.0 }
 0x83f   : > { %v2929_v13 = vsub.f32 %v1420_v49, %v1474_v14  ;;  %1500 = vadd.xlane.f32.xlu1 %v1499_v29  ;;  %v1496_v46 = vsel %vm254_vm0, %v1488_v38, 0.0 }
 0x840   : > { %1497 = vadd.xlane.f32.xlu0 %v1496_v46  ;;  %v1491_v18 = vmul.f32 %v2926_v12, %v2926_v12 }
 0x841   : > { %v1490_v19 = vmul.f32 %v2929_v13, %v2929_v13 }
 0x842   : > { %v1465_v30 = vpop.xlane.xlu1 %1464  ;;  %v1505_v20 = vsel %vm254_vm0, %v1491_v18, 0.0 }
 0x843   : > { %v1477_v52 = vmul.f32 0.03125, %v1465_v30  ;;  %v1462_v51 = vpop.xlane.xlu0 %1461  ;;  %1506 = vadd.xlane.f32.xlu1 %v1505_v20  ;;  %v1502_v24 = vsel %vm254_vm0, %v1490_v19, 0.0 }
 0x844   : > { %v1476_v26 = vmul.f32 0.03125, %v1462_v51  ;;  %1503 = vadd.xlane.f32.xlu0 %v1502_v24 }
 0x845   : > { %v2938_v56 = vsub.f32 %v1435_v53, %v1477_v52 }
 0x846   : > { %v2940_v60 = vsub.f32 %v1430_v55, %v1476_v26  ;;  %v1471_v27 = vpop.xlane.xlu1 %1470 }
 0x847   : > { %v1479_v7 = vmul.f32 0.03125, %v1471_v27  ;;  %v1468_v58 = vpop.xlane.xlu0 %1467  ;;  %v1493_v61 = vmul.f32 %v2938_v56, %v2938_v56  ;;  %v2229_v27 = vld [vmem:[%s2614_s28 + $0x8] sm:$0xff] }
 0x848   : > { %v1478_v31 = vmul.f32 0.03125, %v1468_v58  ;;  %v1492_v32 = vmul.f32 %v2940_v60, %v2940_v60 }
 0x849   : > { %v2946_v33 = vsub.f32 %v1445_v59, %v1479_v7  ;;  %v1511_v1 = vsel %vm254_vm0, %v1493_v61, 0.0  ;;  %v2230_v61 = vld [vmem:[%s2614_s28] sm:$0xff] }
 0x84a   : > { %v2949_v3 = vsub.f32 %v1440_v21, %v1478_v31  ;;  %1512 = vadd.xlane.f32.xlu1 %v1511_v1  ;;  %v1508_v6 = vsel %vm254_vm0, %v1492_v32, 0.0 }
 0x84b   : > { %1509 = vadd.xlane.f32.xlu0 %v1508_v6  ;;  %v1495_v35 = vmul.f32 %v2946_v33, %v2946_v33 }
 0x84c   : > { %v1494_v39 = vmul.f32 %v2949_v3, %v2949_v3 }
 0x84d   : > { %v1517_v37 = vsel %vm254_vm0, %v1495_v35, 0.0 }
 0x84e   : > { %1518 = vadd.xlane.f32.xlu1 %v1517_v37  ;;  %v1514_v40 = vsel %vm254_vm0, %v1494_v39, 0.0 }
 0x84f   : > { %1515 = vadd.xlane.f32.xlu0 %v1514_v40  ;;  %v2231_v40 = vld [vmem:[%s2614_s28 + $0x18] sm:$0xff] }
 0x8cc   : > { %v1501_v42 = vpop.xlane.xlu1 %1500 }
 0x8cd   : > { %v1521_v43 = vmul.f32 0.03125, %v1501_v42  ;;  %v1498_v48 = vpop.xlane.xlu0 %1497 }
 0x8ce   : > { %v1520_v49 = vmul.f32 0.03125, %v1498_v48  ;;  %v2232_v48 = vld [vmem:[%s2614_s28 + $0x10] sm:$0xff] }
 0x8cf   : > { %v1529_v9 = vadd.f32 1e-05, %v1521_v43 }
 0x8d0   : > { %v1528_v50 = vadd.f32 1e-05, %v1520_v49  ;;  %v1507_v41 = vpop.xlane.xlu1 %1506 }
 0x8d1   : > { %2196 = vrsqrt.f32 %v1529_v9  ;;  %v1523_v53 = vmul.f32 0.03125, %v1507_v41  ;;  %v1504_v10 = vpop.xlane.xlu0 %1503 }
 0x8d2   : > { %2198 = vrsqrt.f32 %v1528_v50  ;;  %v1522_v54 = vmul.f32 0.03125, %v1504_v10 }
 0x8d3   : > { %v1531_v55 = vadd.f32 1e-05, %v1523_v53 }
 0x8d4   : > { %v1530_v57 = vadd.f32 1e-05, %v1522_v54 }
 0x8d5   : > { %2200 = vrsqrt.f32 %v1531_v55 }
 0x8d6   : > { %2202 = vrsqrt.f32 %v1530_v57 }
 0x8d7   : > { %v1513_v59 = vpop.xlane.xlu1 %1512 }
 0x8d8   : > { %v1525_v34 = vmul.f32 0.03125, %v1513_v59  ;;  %v1510_v21 = vpop.xlane.xlu0 %1509 }
 0x8d9   : > { %v1524_v22 = vmul.f32 0.03125, %v1510_v21 }
 0x8da   : > { %v1533_v63 = vadd.f32 1e-05, %v1525_v34 }
 0x8db   : > { %v2197_v0 = vpop.eup %2196  ;;  %v1532_v2 = vadd.f32 1e-05, %v1524_v22  ;;  %v1519_v17 = vpop.xlane.xlu1 %1518 }
 0x8dc   : > { %v2199_v4 = vpop.eup %2198  ;;  %2204 = vrsqrt.f32 %v1533_v63  ;;  %v1527_v16 = vmul.f32 0.03125, %v1519_v17  ;;  %v1516_v45 = vpop.xlane.xlu0 %1515  ;;  %v1545_v11 = vmul.f32 %v2197_v0, %v2918_v28  ;;  %v2233_v63 = vld [vmem:[%s2614_s28 + $0x28] sm:$0xff]  ;;  %v2234_v17 = vld [vmem:[%s2614_s28 + $0x20] sm:$0xff] }
 0x8dd   : > { %2206 = vrsqrt.f32 %v1532_v2  ;;  %v1526_v14 = vmul.f32 0.03125, %v1516_v45  ;;  %v1544_v47 = vmul.f32 %v2199_v4, %v2920_v5 }
 0x8de   : > { %v1535_v38 = vadd.f32 1e-05, %v1527_v16  ;;  %v1557_v29 = vmul.f32 %v2961_v62, %v1545_v11 }
 0x8df   : > { %v2201_v46 = vpop.eup %2200  ;;  %v1534_v18 = vadd.f32 1e-05, %v1526_v14  ;;  %v1556_v19 = vmul.f32 %v2961_v62, %v1544_v47  ;;  %v2235_v14 = vld [vmem:[%s2614_s28 + $0x38] sm:$0xff] }
 0x8e0   : > { %v2203_v36 = vpop.eup %2202  ;;  %2208 = vrsqrt.f32 %v1535_v38  ;;  %v1569_v30 = vadd.f32 %v2966_v8, %v1557_v29  ;;  %v1547_v20 = vmul.f32 %v2201_v46, %v2926_v12  ;;  %v2236_v38 = vld [vmem:[%s2614_s28 + $0x30] sm:$0xff] }
 0x8e1   : > { %2210 = vrsqrt.f32 %v1534_v18  ;;  %v1568_v28 = vadd.f32 %v2966_v8, %v1556_v19  ;;  %v1546_v5 = vmul.f32 %v2203_v36, %v2929_v13 }
 0x8e2   : > { %v1577_v52 = vmax.f32 %v1569_v30, 0.0  ;;  %v1559_v51 = vmul.f32 %v2961_v62, %v1547_v20 }
 0x8e3   : > { %v1576_v24 = vmax.f32 %v1568_v28, 0.0  ;;  %v1558_v26 = vmul.f32 %v2961_v62, %v1546_v5 }
 0x8e4   : > { %v1585_v7 = vadd.f32 %v2229_v27, %v1577_v52  ;;  %v1571_v58 = vadd.f32 %v2966_v8, %v1559_v51 }
 0x8e5   : > { %v1584_v31 = vadd.f32 %v2230_v61, %v1576_v24  ;;  %v1570_v12 = vadd.f32 %v2966_v8, %v1558_v26 }
 0x8e6   : > { %v2205_v32 = vpop.eup %2204  ;;  %v1595_v1 = vsel %vm254_vm0, %v1585_v7, 0.0  ;;  %v1579_v13 = vmax.f32 %v1571_v58, 0.0 }
 0x8e7   : > { %v2207_v6 = vpop.eup %2206  ;;  %1596 = vadd.xlane.f32.xlu1 %v1595_v1  ;;  %v1592_v35 = vsel %vm254_vm0, %v1584_v31, 0.0  ;;  %v1578_v39 = vmax.f32 %v1570_v12, 0.0  ;;  %v1549_v37 = vmul.f32 %v2205_v32, %v2938_v56 }
 0x8e8   : > { %1593 = vadd.xlane.f32.xlu0 %v1592_v35  ;;  %v1587_v42 = vadd.f32 %v2231_v40, %v1579_v13  ;;  %v1548_v43 = vmul.f32 %v2207_v6, %v2940_v60 }
 0x8e9   : > { %v1586_v49 = vadd.f32 %v2232_v48, %v1578_v39  ;;  %v1561_v9 = vmul.f32 %v2961_v62, %v1549_v37 }
 0x8ea   : > { %v2209_v50 = vpop.eup %2208  ;;  %v1601_v41 = vsel %vm254_vm0, %v1587_v42, 0.0  ;;  %v1560_v53 = vmul.f32 %v2961_v62, %v1548_v43 }
 0x8eb   : > { %v2211_v10 = vpop.eup %2210  ;;  %1602 = vadd.xlane.f32.xlu1 %v1601_v41  ;;  %v1598_v56 = vsel %vm254_vm0, %v1586_v49, 0.0  ;;  %v1573_v54 = vadd.f32 %v2966_v8, %v1561_v9  ;;  %v1551_v55 = vmul.f32 %v2209_v50, %v2946_v33 }
 0x8ec   : > { %1599 = vadd.xlane.f32.xlu0 %v1598_v56  ;;  %v1572_v60 = vadd.f32 %v2966_v8, %v1560_v53  ;;  %v1550_v57 = vmul.f32 %v2211_v10, %v2949_v3 }
 0x8ed   : > { %v1581_v59 = vmax.f32 %v1573_v54, 0.0  ;;  %v1563_v34 = vmul.f32 %v2961_v62, %v1551_v55 }
 0x8ee   : > { %v1580_v21 = vmax.f32 %v1572_v60, 0.0  ;;  %v1562_v22 = vmul.f32 %v2961_v62, %v1550_v57 }
 0x8ef   : > { %v1589_v0 = vadd.f32 %v2233_v63, %v1581_v59  ;;  %v1575_v2 = vadd.f32 %v2966_v8, %v1563_v34 }
 0x8f0   : > { %v1588_v4 = vadd.f32 %v2234_v17, %v1580_v21  ;;  %v1574_v33 = vadd.f32 %v2966_v8, %v1562_v22 }
 0x8f1   : > { %v1607_v16 = vsel %vm254_vm0, %v1589_v0, 0.0  ;;  %v1583_v45 = vmax.f32 %v1575_v2, 0.0 }
 0x8f2   : > { %1608 = vadd.xlane.f32.xlu1 %v1607_v16  ;;  %v1604_v3 = vsel %vm254_vm0, %v1588_v4, 0.0  ;;  %v1582_v11 = vmax.f32 %v1574_v33, 0.0 }
 0x8f3   : > { %1605 = vadd.xlane.f32.xlu0 %v1604_v3  ;;  %v1591_v47 = vadd.f32 %v2235_v14, %v1583_v45 }
 0x8f4   : > { %v1590_v62 = vadd.f32 %v2236_v38, %v1582_v11  ;;  %v1699_v38 = vrot.slane %v2887_v44, %v760_v23 }
 0x8f5   : > { %v1613_v29 = vsel %vm254_vm0, %v1591_v47, 0.0 }
 0x8f6   : > { %1614 = vadd.xlane.f32.xlu1 %v1613_v29  ;;  %v1610_v46 = vsel %vm254_vm0, %v1590_v62, 0.0 }
 0x8f7   : > { %1611 = vadd.xlane.f32.xlu0 %v1610_v46 }
 0x974   : > { %v1597_v18 = vpop.xlane.xlu1 %1596 }
 0x975   : > { %v1617_v8 = vmul.f32 0.03125, %v1597_v18  ;;  %v1594_v19 = vpop.xlane.xlu0 %1593 }
 0x976   : > { %v1616_v36 = vmul.f32 0.03125, %v1594_v19  ;;  %v1711_v19 = vrot.slane %v2887_v44, %v772_v25 }
 0x977   : > { %v3008_v30 = vsub.f32 %v1585_v7, %v1617_v8 }
 0x978   : > { %v3010_v20 = vsub.f32 %v1584_v31, %v1616_v36  ;;  %v1603_v28 = vpop.xlane.xlu1 %1602 }
 0x979   : > { %v1619_v5 = vmul.f32 0.03125, %v1603_v28  ;;  %v1600_v52 = vpop.xlane.xlu0 %1599  ;;  %v1633_v51 = vmul.f32 %v3008_v30, %v3008_v30 }
 0x97a   : > { %v1618_v24 = vmul.f32 0.03125, %v1600_v52  ;;  %v1632_v26 = vmul.f32 %v3010_v20, %v3010_v20 }
 0x97b   : > { %v3016_v27 = vsub.f32 %v1587_v42, %v1619_v5  ;;  %v1643_v58 = vsel %vm254_vm0, %v1633_v51, 0.0 }
 0x97c   : > { %v3019_v61 = vsub.f32 %v1586_v49, %v1618_v24  ;;  %1644 = vadd.xlane.f32.xlu1 %v1643_v58  ;;  %v1640_v7 = vsel %vm254_vm0, %v1632_v26, 0.0 }
 0x97d   : > { %1641 = vadd.xlane.f32.xlu0 %v1640_v7  ;;  %v1635_v31 = vmul.f32 %v3016_v27, %v3016_v27 }
 0x97e   : > { %v1634_v12 = vmul.f32 %v3019_v61, %v3019_v61 }
 0x97f   : > { %v1609_v32 = vpop.xlane.xlu1 %1608  ;;  %v1649_v1 = vsel %vm254_vm0, %v1635_v31, 0.0 }
 0x980   : > { %v1621_v13 = vmul.f32 0.03125, %v1609_v32  ;;  %v1606_v6 = vpop.xlane.xlu0 %1605  ;;  %1650 = vadd.xlane.f32.xlu1 %v1649_v1  ;;  %v1646_v35 = vsel %vm254_vm0, %v1634_v12, 0.0 }
 0x981   : > { %v1620_v39 = vmul.f32 0.03125, %v1606_v6  ;;  %1647 = vadd.xlane.f32.xlu0 %v1646_v35 }
 0x982   : > { %v3028_v37 = vsub.f32 %v1589_v0, %v1621_v13 }
 0x983   : > { %v3030_v40 = vsub.f32 %v1588_v4, %v1620_v39  ;;  %v1615_v42 = vpop.xlane.xlu1 %1614 }
 0x984   : > { %v1623_v43 = vmul.f32 0.03125, %v1615_v42  ;;  %v1612_v48 = vpop.xlane.xlu0 %1611  ;;  %v1637_v49 = vmul.f32 %v3028_v37, %v3028_v37 }
 0x985   : > { %v1622_v9 = vmul.f32 0.03125, %v1612_v48  ;;  %v1636_v50 = vmul.f32 %v3030_v40, %v3030_v40 }
 0x986   : > { %v3036_v41 = vsub.f32 %v1591_v47, %v1623_v43  ;;  %v1655_v53 = vsel %vm254_vm0, %v1637_v49, 0.0 }
 0x987   : > { %v3039_v10 = vsub.f32 %v1590_v62, %v1622_v9  ;;  %1656 = vadd.xlane.f32.xlu1 %v1655_v53  ;;  %v1652_v56 = vsel %vm254_vm0, %v1636_v50, 0.0 }
 0x988   : > { %1653 = vadd.xlane.f32.xlu0 %v1652_v56  ;;  %v1639_v54 = vmul.f32 %v3036_v41, %v3036_v41 }
 0x989   : > { %v1638_v55 = vmul.f32 %v3039_v10, %v3039_v10 }
 0x98a   : > { %v1661_v60 = vsel %vm254_vm0, %v1639_v54, 0.0 }
 0x98b   : > { %1662 = vadd.xlane.f32.xlu1 %v1661_v60  ;;  %v1658_v57 = vsel %vm254_vm0, %v1638_v55, 0.0 }
 0x98c   : > { %1659 = vadd.xlane.f32.xlu0 %v1658_v57 }
 0xa09   : > { %v1645_v59 = vpop.xlane.xlu1 %1644 }
 0xa0a   : > { %v1665_v34 = vmul.f32 0.03125, %v1645_v59  ;;  %v1642_v21 = vpop.xlane.xlu0 %1641 }
 0xa0b   : > { %v1664_v22 = vmul.f32 0.03125, %v1642_v21 }
 0xa0c   : > { %v1673_v63 = vadd.f32 1e-05, %v1665_v34 }
 0xa0d   : > { %v1672_v0 = vadd.f32 1e-05, %v1664_v22  ;;  %v1651_v2 = vpop.xlane.xlu1 %1650 }
 0xa0e   : > { %2212 = vrsqrt.f32 %v1673_v63  ;;  %v1667_v17 = vmul.f32 0.03125, %v1651_v2  ;;  %v1648_v4 = vpop.xlane.xlu0 %1647 }
 0xa0f   : > { %2214 = vrsqrt.f32 %v1672_v0  ;;  %v1666_v33 = vmul.f32 0.03125, %v1648_v4 }
 0xa10   : > { %v1675_v16 = vadd.f32 1e-05, %v1667_v17 }
 0xa11   : > { %v1674_v45 = vadd.f32 1e-05, %v1666_v33 }
 0xa12   : > { %2216 = vrsqrt.f32 %v1675_v16 }
 0xa13   : > { %2218 = vrsqrt.f32 %v1674_v45 }
 0xa14   : > { %v1657_v3 = vpop.xlane.xlu1 %1656 }
 0xa15   : > { %v1669_v11 = vmul.f32 0.03125, %v1657_v3  ;;  %v1654_v14 = vpop.xlane.xlu0 %1653 }
 0xa16   : > { %v1668_v47 = vmul.f32 0.03125, %v1654_v14 }
 0xa17   : > { %v1677_v62 = vadd.f32 1e-05, %v1669_v11 }
 0xa18   : > { %v2213_v29 = vpop.eup %2212  ;;  %v1676_v46 = vadd.f32 1e-05, %v1668_v47  ;;  %v1663_v18 = vpop.xlane.xlu1 %1662 }
 0xa19   : > { %v2215_v8 = vpop.eup %2214  ;;  %v1689_v36 = vmul.f32 %v2213_v29, %v3008_v30  ;;  %2220 = vrsqrt.f32 %v1677_v62  ;;  %v1671_v28 = vmul.f32 0.03125, %v1663_v18  ;;  %v1660_v5 = vpop.xlane.xlu0 %1659 }
 0xa1a   : > { %v1688_v52 = vmul.f32 %v2215_v8, %v3010_v20  ;;  %2222 = vrsqrt.f32 %v1676_v46  ;;  %v1670_v51 = vmul.f32 0.03125, %v1660_v5 }
 0xa1b   : > { %v1701_v23 = vmul.f32 %v1699_v38, %v1689_v36  ;;  %v1679_v24 = vadd.f32 1e-05, %v1671_v28 }
 0xa1c   : > { %v2217_v26 = vpop.eup %2216  ;;  %v1700_v58 = vmul.f32 %v1699_v38, %v1688_v52  ;;  %v1678_v7 = vadd.f32 1e-05, %v1670_v51 }
 0xa1d   : > { %v2219_v31 = vpop.eup %2218  ;;  %v1713_v12 = vadd.f32 %v1711_v19, %v1701_v23  ;;  %v1691_v15 = vmul.f32 %v2217_v26, %v3016_v27  ;;  %2224 = vrsqrt.f32 %v1679_v24 }
 0xa1e   : > { %v1712_v25 = vadd.f32 %v1711_v19, %v1700_v58  ;;  %v1690_v44 = vmul.f32 %v2219_v31, %v3019_v61  ;;  %2226 = vrsqrt.f32 %v1678_v7 }
 0xa1f   : > { %1721 = vst.msk [vmem:[%s3060_s18 + $0x8] sm:$0xff] %vm254_vm0, %v1713_v12  ;;  %v1703_v30 = vmul.f32 %v1699_v38, %v1691_v15 }
 0xa20   : > { %1720 = vst.msk [vmem:[%s3060_s18] sm:$0xff] %vm254_vm0, %v1712_v25  ;;  %v1702_v20 = vmul.f32 %v1699_v38, %v1690_v44 }
 0xa21   : > { %v1715_v32 = vadd.f32 %v1711_v19, %v1703_v30 }
 0xa22   : > { %v1714_v27 = vadd.f32 %v1711_v19, %v1702_v20 }
 0xa23   : > { %v2221_v1 = vpop.eup %2220  ;;  %1723 = vst.msk [vmem:[%s3060_s18 + $0x18] sm:$0xff] %vm254_vm0, %v1715_v32 }
 0xa24   : > { %v2223_v61 = vpop.eup %2222  ;;  %1722 = vst.msk [vmem:[%s3060_s18 + $0x10] sm:$0xff] %vm254_vm0, %v1714_v27  ;;  %v1693_v13 = vmul.f32 %v2221_v1, %v3028_v37 }
 0xa25   : > { %v1692_v6 = vmul.f32 %v2223_v61, %v3030_v40 }
 0xa26   : > { %v1705_v35 = vmul.f32 %v1699_v38, %v1693_v13 }
 0xa27   : > { %v2225_v39 = vpop.eup %2224  ;;  %v1704_v42 = vmul.f32 %v1699_v38, %v1692_v6 }
 0xa28   : > { %v2227_v43 = vpop.eup %2226  ;;  %v1717_v48 = vadd.f32 %v1711_v19, %v1705_v35  ;;  %v1695_v49 = vmul.f32 %v2225_v39, %v3036_v41 }
 0xa29   : > { %v1716_v9 = vadd.f32 %v1711_v19, %v1704_v42  ;;  %v1694_v50 = vmul.f32 %v2227_v43, %v3039_v10 }
 0xa2a   : > { %1725 = vst.msk [vmem:[%s3060_s18 + $0x28] sm:$0xff] %vm254_vm0, %v1717_v48  ;;  %v1707_v37 = vmul.f32 %v1699_v38, %v1695_v49 }
 0xa2b   : > { %1724 = vst.msk [vmem:[%s3060_s18 + $0x20] sm:$0xff] %vm254_vm0, %v1716_v9  ;;  %v1706_v40 = vmul.f32 %v1699_v38, %v1694_v50 }
 0xa2c   : > { %v1719_v53 = vadd.f32 %v1711_v19, %v1707_v37 }
 0xa2d   : > { %v1718_v41 = vadd.f32 %v1711_v19, %v1706_v40 }
 0xa2e   : > { %1727 = vst.msk [vmem:[%s3060_s18 + $0x38] sm:$0xff] %vm254_vm0, %v1719_v53 }
 0xa2f   : > { %1726 = vst.msk [vmem:[%s3060_s18 + $0x30] sm:$0xff] %vm254_vm0, %v1718_v41 }
 0xa30   : > { %2336 = shalt.err (!%p2333_p1)
}
 0xa31   : > { %s2337_s10 = scalar_lea.hbm %s3083_s27, 1024  ;;  %s2341_s26 = scalar_lea.hbm %s3136_s3, 2048 }
 0xa32   : > { %p2338_p13 = scmp.ne.s32.totalorder %s3083_s27, %s2337_s10  ;;  %p2342_p4 = scmp.lt.u32.totalorder %s3083_s27, %s3136_s3 }
 0xa33   : > { %p2343_p5 = scmp.lt.u32.totalorder %s2341_s26, %s2337_s10  ;;  %p2345_p11 = scmp.lt.u32.totalorder %s2337_s10, %s3083_s27 }
 0xa34   : > { %p2339_p6 = pnand %p2338_p13, %p3150_p0 }
 0xa35   : > { %p2344_p8 = por %p2343_p5, %p2342_p4 }
 0xa36   : > { %p2340_p10 = pneg %p2339_p6 }
 0xa37   : > { %p2346_p2 = por %p2345_p11, %p2344_p8 }
 0xa39   : > { %p2347_p3 = pnand %p2346_p2, %p2340_p10 }
 0xa3b   : > { %2350 = shalt.err (!%p2347_p3)
}
 0xa3c   : > { %s2405_s28 = smov 128   ;;  %s2406_s18 = smov 8  }
 0xa3d   : > { %2083 = dma.vmem_to_hbm [thread:$0]  (%p3150_p0), %s3085_s7, 1024, %s3083_s27, %s1729_s16, %s2405_s28, %s2405_s28, %s2406_s18  }
 0xa3e PF: > { %s1757_s20 = sand.u32 1, %s2381_s12   ;;  %p3151_p7 = scmp.ne.s32.totalorder %s3141_s19, 0 }
 0xa3f   : > { %p3152_p9 = scmp.ge.s32.totalorder %s2393_s15, 2  ;;  %s1758_s8 = scalar_lea.sflag [#allocation4], %s1757_s20 }
 0xa41   : > { %p2097_p12 = pnand %p3152_p9, %p3151_p7 }
 0xa43   : > { %2376 = dma.done.wait (!%p2097_p12), %s1758_s8, 1024  }
 0xa44   : > { %2378 = vsyncadd (!%p2097_p12), %s1758_s8, 4294966272  ;;  %p17_p1 = scmp.ge.s32.totalorder %s2543_s23, 4   ;;  %s3153_s12 = smov %s2385_s13 }
 0xa45   : > { %s3154_s13 = smov %s2389_s14  ;;  %s3155_s14 = smov %s2559_s9 }
 0xa46   : > { %s3156_s15 = smov %s2543_s23  ;;  %19 = sbr.rel (!%p17_p1) target bundleno = 6 (0x6), region = 85 }
 0xa4d   :  { %1763 = vsyncpa [#allocation3], 1 }
 0xa4e   :  { %1765 = vsyncpa [#allocation3 + $0x1], 1 }
 0xa4f   :  { %1766 = vsyncpa [#allocation6], 1 }
 0xa50   :  { %1767 = vsyncpa [#allocation4], 1 }
 0xa51   :  { %1769 = vsyncpa [#allocation4 + $0x1], 1 }

</bundles_post_ra>
